<compile_context>
chip_gen: v5e
topology: v5e:2x2
jax: 0.10.0
libtpu: 0.0.40
codegen_flags: <defaults>
</compile_context>

<pallas_src>
import functools
import math

import jax
import jax.numpy as jnp
from jax.experimental import pallas as pl
from jax.experimental.pallas import tpu as pltpu

BN_EPS = 1e-5


def _residual_net_kernel(block_has_proj, x_ref, *refs):
    """Whole-network forward for one batch tile. refs = (*param_refs, out_ref)."""
    out_ref = refs[-1]
    params = list(refs[:-1])
    idx = 0

    def take():
        nonlocal idx
        p = params[idx]
        idx += 1
        return p

    f32, bf16 = jnp.float32, jnp.bfloat16

    def dense(h_f32, w_ref, b_ref):
        # bf16 x bf16 MXU matmul with f32 accumulation; bias add stays f32 on the VPU.
        return jnp.dot(h_f32.astype(bf16), w_ref[...],
                       preferred_element_type=f32) + b_ref[...]

    h = x_ref[...].astype(f32)

    # input_fc + relu
    h = jnp.maximum(dense(h, take(), take()), 0.0)

    # residual blocks (dropout is identity in eval mode)
    for has_proj in block_has_proj:
        w1, b1, w2, b2 = take(), take(), take(), take()
        y = jnp.maximum(dense(h, w1, b1), 0.0)
        y = dense(y, w2, b2)
        if has_proj:
            ws, bs = take(), take()          # BN already folded into (ws, bs)
            sc = dense(h, ws, bs)
        else:
            sc = h
        h = jnp.maximum(y + sc, 0.0)

    # output_fc (lane-padded to a multiple of 128 -> unmasked stores)
    out_ref[...] = dense(h, take(), take()).astype(out_ref.dtype)


def init_params(key, input_size, hidden_sizes, output_size):
    """Deterministic PyTorch-style init. Weights (in, out) in bf16, biases (1, out) f32."""
    def linear(key, d_in, d_out):
        k1, k2 = jax.random.split(key)
        bound = 1.0 / math.sqrt(d_in)
        w = jax.random.uniform(k1, (d_in, d_out), jnp.float32, -bound, bound)
        b = jax.random.uniform(k2, (1, d_out), jnp.float32, -bound, bound)
        return w, b

    params = []          # flat list of arrays, kernel consumption order
    block_has_proj = []  # static structure

    keys = jax.random.split(key, 3 * len(hidden_sizes) + 3)
    kit = iter(keys)

    def push_linear(w, b):
        params.append(w.astype(jnp.bfloat16))   # bf16 weights for the MXU
        params.append(b.astype(jnp.float32))    # f32 biases (VPU math stays f32)

    # input_fc
    push_linear(*linear(next(kit), input_size, hidden_sizes[0]))

    # blocks
    for i in range(1, len(hidden_sizes)):
        d_in, d_out = hidden_sizes[i - 1], hidden_sizes[i]
        push_linear(*linear(next(kit), d_in, d_out))   # fc1
        push_linear(*linear(next(kit), d_out, d_out))  # fc2
        has_proj = d_in != d_out
        block_has_proj.append(has_proj)
        if has_proj:
            ws, bs = linear(next(kit), d_in, d_out)    # shortcut linear
            # Fold eval-mode BatchNorm1d with fresh buffers (mean=0, var=1, gamma=1, beta=0):
            #   y = (x@W + b) * s + t  with s = 1/sqrt(1+eps), t = 0   ->   W *= s, b = b*s + t
            scale = 1.0 / math.sqrt(1.0 + BN_EPS)
            push_linear(ws * scale, bs * scale)

    # output_fc
    push_linear(*linear(next(kit), hidden_sizes[-1], output_size))
    return params, tuple(block_has_proj)


def residual_net_forward(x, params, block_has_proj, output_size, batch_tile=128):
    B, d_in = x.shape
    batch_tile = min(batch_tile, B)
    assert B % batch_tile == 0, "batch must be a multiple of batch_tile"
    grid = (B // batch_tile,)

    # Lane-dense output: pad the output layer's features to a multiple of 128 so the
    # final store is an unmasked vst; extra columns are exactly zero and sliced off.
    out_pad = max(128, ((output_size + 127) // 128) * 128)
    params = list(params)
    wo, bo = params[-2], params[-1]
    if wo.shape[1] != out_pad:
        wo = jnp.zeros((wo.shape[0], out_pad), wo.dtype).at[:, :output_size].set(wo)
        bo = jnp.zeros((1, out_pad), bo.dtype).at[:, :output_size].set(bo)
        params[-2], params[-1] = wo, bo

    # Explicit VMEM budget with headroom (weights + a few activation tiles), so larger
    # hidden sizes / batch tiles don't trip the default scoped-VMEM limit.
    param_bytes = sum(int(p.size) * p.dtype.itemsize for p in params)
    max_width = max([d_in, out_pad] + [int(p.shape[-1]) for p in params])
    act_bytes = 8 * batch_tile * max_width * 4
    vmem_limit = int(min(max(2 * param_bytes + act_bytes + (16 << 20), 32 << 20),
                         112 << 20))

    def build(weights_single_buffered):
        in_specs = [pl.BlockSpec((batch_tile, d_in), lambda i: (i, 0))]
        for p in params:
            if weights_single_buffered:
                # Grid-invariant blocks: no double buffering needed (constant block index).
                spec = pl.BlockSpec(p.shape, lambda i: (0, 0),
                                    pipeline_mode=pl.Buffered(buffer_count=1))
            else:
                spec = pl.BlockSpec(p.shape, lambda i: (0, 0))
            in_specs.append(spec)
        out_spec = pl.BlockSpec((batch_tile, out_pad), lambda i: (i, 0))
        kernel = functools.partial(_residual_net_kernel, block_has_proj)
        return pl.pallas_call(
            kernel,
            out_shape=jax.ShapeDtypeStruct((B, out_pad), x.dtype),
            grid=grid,
            in_specs=in_specs,
            out_specs=out_spec,
            compiler_params=pltpu.CompilerParams(
                dimension_semantics=("parallel",),
                vmem_limit_bytes=vmem_limit),
        )

    try:
        out = build(True)(x, *params)
        out = jax.block_until_ready(out)
    except Exception:
        # pipeline_mode=Buffered(1) not supported on this jax version: use default buffering.
        out = build(False)(x, *params)
        out = jax.block_until_ready(out)

    return out[:, :output_size]


def residual_net_reference(x, params, block_has_proj):
    """Pure-JAX reference mirroring the kernel (bf16 matmuls, f32 accumulate/elementwise)."""
    idx = 0

    def take():
        nonlocal idx
        p = params[idx]
        idx += 1
        return p

    def dense(h, w, b):
        return jnp.dot(h.astype(jnp.bfloat16), w,
                       preferred_element_type=jnp.float32) + b

    w, b = take(), take()
    h = jnp.maximum(dense(x.astype(jnp.float32), w, b), 0.0)
    for has_proj in block_has_proj:
        w1, b1, w2, b2 = take(), take(), take(), take()
        y = jnp.maximum(dense(h, w1, b1), 0.0)
        y = dense(y, w2, b2)
        if has_proj:
            ws, bs = take(), take()
            sc = dense(h, ws, bs)
        else:
            sc = h
        h = jnp.maximum(y + sc, 0.0)
    wo, bo = take(), take()
    return dense(h, wo, bo)


if __name__ == "__main__":
    # Small, forward-consistent shapes; batch=256 with 128-row tiles -> grid=(2,)
    # so both v7x TensorCores get work and each matmul has 128 MXU rows.
    batch = 256
    input_size = 16
    hidden_sizes = [32, 32, 64]   # block0: 32->32 (identity shortcut), block1: 32->64 (proj + BN)
    output_size = 16

    key = jax.random.PRNGKey(0)
    kx, kp = jax.random.split(key)
    x = jax.random.normal(kx, (batch, input_size), jnp.float32)

    params, block_has_proj = init_params(kp, input_size, hidden_sizes, output_size)

    out = residual_net_forward(x, params, block_has_proj, output_size, batch_tile=128)
    out = jax.block_until_ready(out)

    ref = residual_net_reference(x, params, block_has_proj)
    assert out.shape == (batch, output_size)
    assert jnp.allclose(out, ref, atol=1e-3, rtol=1e-3), "kernel mismatch vs reference"

    print("KERNEL_OK")
</pallas_src>

<mosaic_0001>
module attributes {stable_mosaic.version = 11 : i64} {
  func.func @_residual_net_kernel(%arg0: i32, %arg1: memref<128x16xf32, #tpu.memory_space<vmem>>, %arg2: memref<16x32xbf16, #tpu.memory_space<vmem>>, %arg3: memref<1x32xf32, #tpu.memory_space<vmem>>, %arg4: memref<32x32xbf16, #tpu.memory_space<vmem>>, %arg5: memref<1x32xf32, #tpu.memory_space<vmem>>, %arg6: memref<32x32xbf16, #tpu.memory_space<vmem>>, %arg7: memref<1x32xf32, #tpu.memory_space<vmem>>, %arg8: memref<32x64xbf16, #tpu.memory_space<vmem>>, %arg9: memref<1x64xf32, #tpu.memory_space<vmem>>, %arg10: memref<64x64xbf16, #tpu.memory_space<vmem>>, %arg11: memref<1x64xf32, #tpu.memory_space<vmem>>, %arg12: memref<32x64xbf16, #tpu.memory_space<vmem>>, %arg13: memref<1x64xf32, #tpu.memory_space<vmem>>, %arg14: memref<64x128xbf16, #tpu.memory_space<vmem>>, %arg15: memref<1x128xf32, #tpu.memory_space<vmem>>, %arg16: memref<128x128xf32, #tpu.memory_space<vmem>>) attributes {dimension_semantics = [#tpu.dimension_semantics<parallel>], iteration_bounds = array<i64: 2>, scalar_prefetch = 0 : i64, scratch_operands = 0 : i64, tpu.core_type = #tpu.core_type<tc>, window_params = [{transform_indices = @transform_0, window_bounds = array<i64: 128, 16>}, {pipeline_mode = #tpu.pipeline_mode<synchronous>, transform_indices = @transform_1, window_bounds = array<i64: 16, 32>}, {pipeline_mode = #tpu.pipeline_mode<synchronous>, transform_indices = @transform_2, window_bounds = array<i64: 1, 32>}, {pipeline_mode = #tpu.pipeline_mode<synchronous>, transform_indices = @transform_3, window_bounds = array<i64: 32, 32>}, {pipeline_mode = #tpu.pipeline_mode<synchronous>, transform_indices = @transform_4, window_bounds = array<i64: 1, 32>}, {pipeline_mode = #tpu.pipeline_mode<synchronous>, transform_indices = @transform_5, window_bounds = array<i64: 32, 32>}, {pipeline_mode = #tpu.pipeline_mode<synchronous>, transform_indices = @transform_6, window_bounds = array<i64: 1, 32>}, {pipeline_mode = #tpu.pipeline_mode<synchronous>, transform_indices = @transform_7, window_bounds = array<i64: 32, 64>}, {pipeline_mode = #tpu.pipeline_mode<synchronous>, transform_indices = @transform_8, window_bounds = array<i64: 1, 64>}, {pipeline_mode = #tpu.pipeline_mode<synchronous>, transform_indices = @transform_9, window_bounds = array<i64: 64, 64>}, {pipeline_mode = #tpu.pipeline_mode<synchronous>, transform_indices = @transform_10, window_bounds = array<i64: 1, 64>}, {pipeline_mode = #tpu.pipeline_mode<synchronous>, transform_indices = @transform_11, window_bounds = array<i64: 32, 64>}, {pipeline_mode = #tpu.pipeline_mode<synchronous>, transform_indices = @transform_12, window_bounds = array<i64: 1, 64>}, {pipeline_mode = #tpu.pipeline_mode<synchronous>, transform_indices = @transform_13, window_bounds = array<i64: 64, 128>}, {pipeline_mode = #tpu.pipeline_mode<synchronous>, transform_indices = @transform_14, window_bounds = array<i64: 1, 128>}, {transform_indices = @transform_15, window_bounds = array<i64: 128, 128>}]} {
    %c0 = arith.constant 0 : index
    %c0_0 = arith.constant 0 : index
    %0 = vector.load %arg1[%c0, %c0_0] : memref<128x16xf32, #tpu.memory_space<vmem>>, vector<128x16xf32>
    %1 = arith.truncf %0 : vector<128x16xf32> to vector<128x16xbf16>
    %c0_1 = arith.constant 0 : index
    %c0_2 = arith.constant 0 : index
    %2 = vector.load %arg2[%c0_1, %c0_2] : memref<16x32xbf16, #tpu.memory_space<vmem>>, vector<16x32xbf16>
    %cst = arith.constant dense<0.000000e+00> : vector<128x32xf32>
    %3 = tpu.matmul %1, %2, %cst {dimension_numbers = #tpu.dot_dimension_numbers<[1], [0], [0], [1], [0, 0, 1, 1], [], []>} : vector<128x16xbf16>, vector<16x32xbf16>, vector<128x32xf32> -> vector<128x32xf32>
    %c0_3 = arith.constant 0 : index
    %c0_4 = arith.constant 0 : index
    %4 = vector.load %arg3[%c0_3, %c0_4] : memref<1x32xf32, #tpu.memory_space<vmem>>, vector<1x32xf32>
    %5 = vector.broadcast %4 : vector<1x32xf32> to vector<128x32xf32>
    %6 = arith.addf %3, %5 : vector<128x32xf32>
    %cst_5 = arith.constant 0.000000e+00 : f32
    %7 = vector.broadcast %cst_5 : f32 to vector<128x32xf32>
    %8 = arith.maximumf %6, %7 : vector<128x32xf32>
    %9 = arith.truncf %8 : vector<128x32xf32> to vector<128x32xbf16>
    %c0_6 = arith.constant 0 : index
    %c0_7 = arith.constant 0 : index
    %10 = vector.load %arg4[%c0_6, %c0_7] : memref<32x32xbf16, #tpu.memory_space<vmem>>, vector<32x32xbf16>
    %cst_8 = arith.constant dense<0.000000e+00> : vector<128x32xf32>
    %11 = tpu.matmul %9, %10, %cst_8 {dimension_numbers = #tpu.dot_dimension_numbers<[1], [0], [0], [1], [0, 0, 1, 1], [], []>} : vector<128x32xbf16>, vector<32x32xbf16>, vector<128x32xf32> -> vector<128x32xf32>
    %c0_9 = arith.constant 0 : index
    %c0_10 = arith.constant 0 : index
    %12 = vector.load %arg5[%c0_9, %c0_10] : memref<1x32xf32, #tpu.memory_space<vmem>>, vector<1x32xf32>
    %13 = vector.broadcast %12 : vector<1x32xf32> to vector<128x32xf32>
    %14 = arith.addf %11, %13 : vector<128x32xf32>
    %cst_11 = arith.constant 0.000000e+00 : f32
    %15 = vector.broadcast %cst_11 : f32 to vector<128x32xf32>
    %16 = arith.maximumf %14, %15 : vector<128x32xf32>
    %17 = arith.truncf %16 : vector<128x32xf32> to vector<128x32xbf16>
    %c0_12 = arith.constant 0 : index
    %c0_13 = arith.constant 0 : index
    %18 = vector.load %arg6[%c0_12, %c0_13] : memref<32x32xbf16, #tpu.memory_space<vmem>>, vector<32x32xbf16>
    %cst_14 = arith.constant dense<0.000000e+00> : vector<128x32xf32>
    %19 = tpu.matmul %17, %18, %cst_14 {dimension_numbers = #tpu.dot_dimension_numbers<[1], [0], [0], [1], [0, 0, 1, 1], [], []>} : vector<128x32xbf16>, vector<32x32xbf16>, vector<128x32xf32> -> vector<128x32xf32>
    %c0_15 = arith.constant 0 : index
    %c0_16 = arith.constant 0 : index
    %20 = vector.load %arg7[%c0_15, %c0_16] : memref<1x32xf32, #tpu.memory_space<vmem>>, vector<1x32xf32>
    %21 = vector.broadcast %20 : vector<1x32xf32> to vector<128x32xf32>
    %22 = arith.addf %19, %21 : vector<128x32xf32>
    %23 = arith.addf %22, %8 : vector<128x32xf32>
    %cst_17 = arith.constant 0.000000e+00 : f32
    %24 = vector.broadcast %cst_17 : f32 to vector<128x32xf32>
    %25 = arith.maximumf %23, %24 : vector<128x32xf32>
    %26 = arith.truncf %25 : vector<128x32xf32> to vector<128x32xbf16>
    %c0_18 = arith.constant 0 : index
    %c0_19 = arith.constant 0 : index
    %27 = vector.load %arg8[%c0_18, %c0_19] : memref<32x64xbf16, #tpu.memory_space<vmem>>, vector<32x64xbf16>
    %cst_20 = arith.constant dense<0.000000e+00> : vector<128x64xf32>
    %28 = tpu.matmul %26, %27, %cst_20 {dimension_numbers = #tpu.dot_dimension_numbers<[1], [0], [0], [1], [0, 0, 1, 1], [], []>} : vector<128x32xbf16>, vector<32x64xbf16>, vector<128x64xf32> -> vector<128x64xf32>
    %c0_21 = arith.constant 0 : index
    %c0_22 = arith.constant 0 : index
    %29 = vector.load %arg9[%c0_21, %c0_22] : memref<1x64xf32, #tpu.memory_space<vmem>>, vector<1x64xf32>
    %30 = vector.broadcast %29 : vector<1x64xf32> to vector<128x64xf32>
    %31 = arith.addf %28, %30 : vector<128x64xf32>
    %cst_23 = arith.constant 0.000000e+00 : f32
    %32 = vector.broadcast %cst_23 : f32 to vector<128x64xf32>
    %33 = arith.maximumf %31, %32 : vector<128x64xf32>
    %34 = arith.truncf %33 : vector<128x64xf32> to vector<128x64xbf16>
    %c0_24 = arith.constant 0 : index
    %c0_25 = arith.constant 0 : index
    %35 = vector.load %arg10[%c0_24, %c0_25] : memref<64x64xbf16, #tpu.memory_space<vmem>>, vector<64x64xbf16>
    %cst_26 = arith.constant dense<0.000000e+00> : vector<128x64xf32>
    %36 = tpu.matmul %34, %35, %cst_26 {dimension_numbers = #tpu.dot_dimension_numbers<[1], [0], [0], [1], [0, 0, 1, 1], [], []>} : vector<128x64xbf16>, vector<64x64xbf16>, vector<128x64xf32> -> vector<128x64xf32>
    %c0_27 = arith.constant 0 : index
    %c0_28 = arith.constant 0 : index
    %37 = vector.load %arg11[%c0_27, %c0_28] : memref<1x64xf32, #tpu.memory_space<vmem>>, vector<1x64xf32>
    %38 = vector.broadcast %37 : vector<1x64xf32> to vector<128x64xf32>
    %39 = arith.addf %36, %38 : vector<128x64xf32>
    %40 = arith.truncf %25 : vector<128x32xf32> to vector<128x32xbf16>
    %c0_29 = arith.constant 0 : index
    %c0_30 = arith.constant 0 : index
    %41 = vector.load %arg12[%c0_29, %c0_30] : memref<32x64xbf16, #tpu.memory_space<vmem>>, vector<32x64xbf16>
    %cst_31 = arith.constant dense<0.000000e+00> : vector<128x64xf32>
    %42 = tpu.matmul %40, %41, %cst_31 {dimension_numbers = #tpu.dot_dimension_numbers<[1], [0], [0], [1], [0, 0, 1, 1], [], []>} : vector<128x32xbf16>, vector<32x64xbf16>, vector<128x64xf32> -> vector<128x64xf32>
    %c0_32 = arith.constant 0 : index
    %c0_33 = arith.constant 0 : index
    %43 = vector.load %arg13[%c0_32, %c0_33] : memref<1x64xf32, #tpu.memory_space<vmem>>, vector<1x64xf32>
    %44 = vector.broadcast %43 : vector<1x64xf32> to vector<128x64xf32>
    %45 = arith.addf %42, %44 : vector<128x64xf32>
    %46 = arith.addf %39, %45 : vector<128x64xf32>
    %cst_34 = arith.constant 0.000000e+00 : f32
    %47 = vector.broadcast %cst_34 : f32 to vector<128x64xf32>
    %48 = arith.maximumf %46, %47 : vector<128x64xf32>
    %49 = arith.truncf %48 : vector<128x64xf32> to vector<128x64xbf16>
    %c0_35 = arith.constant 0 : index
    %c0_36 = arith.constant 0 : index
    %50 = vector.load %arg14[%c0_35, %c0_36] : memref<64x128xbf16, #tpu.memory_space<vmem>>, vector<64x128xbf16>
    %cst_37 = arith.constant dense<0.000000e+00> : vector<128x128xf32>
    %51 = tpu.matmul %49, %50, %cst_37 {dimension_numbers = #tpu.dot_dimension_numbers<[1], [0], [0], [1], [0, 0, 1, 1], [], []>} : vector<128x64xbf16>, vector<64x128xbf16>, vector<128x128xf32> -> vector<128x128xf32>
    %c0_38 = arith.constant 0 : index
    %c0_39 = arith.constant 0 : index
    %52 = vector.load %arg15[%c0_38, %c0_39] : memref<1x128xf32, #tpu.memory_space<vmem>>, vector<1x128xf32>
    %53 = vector.broadcast %52 : vector<1x128xf32> to vector<128x128xf32>
    %54 = arith.addf %51, %53 : vector<128x128xf32>
    %c0_40 = arith.constant 0 : index
    %c0_41 = arith.constant 0 : index
    %55 = vector.load %arg16[%c0_40, %c0_41] : memref<128x128xf32, #tpu.memory_space<vmem>>, vector<128x128xf32>
    tpu.vector_store %arg16[%c0_40, %c0_41], %54 {strides = array<i32>} : memref<128x128xf32, #tpu.memory_space<vmem>>, vector<128x128xf32>,
    return
  }
  func.func @transform_0(%arg0: i32) -> (i32, i32) {
    %c0_i32 = arith.constant 0 : i32
    %c0_i32_0 = arith.constant 0 : i32
    return %arg0, %c0_i32 : i32, i32
  }
  func.func @transform_1(%arg0: i32) -> (i32, i32) {
    %c0_i32 = arith.constant 0 : i32
    %c0_i32_0 = arith.constant 0 : i32
    %c0_i32_1 = arith.constant 0 : i32
    return %c0_i32, %c0_i32_0 : i32, i32
  }
  func.func @transform_2(%arg0: i32) -> (i32, i32) {
    %c0_i32 = arith.constant 0 : i32
    %c0_i32_0 = arith.constant 0 : i32
    %c0_i32_1 = arith.constant 0 : i32
    return %c0_i32, %c0_i32_0 : i32, i32
  }
  func.func @transform_3(%arg0: i32) -> (i32, i32) {
    %c0_i32 = arith.constant 0 : i32
    %c0_i32_0 = arith.constant 0 : i32
    %c0_i32_1 = arith.constant 0 : i32
    return %c0_i32, %c0_i32_0 : i32, i32
  }
  func.func @transform_4(%arg0: i32) -> (i32, i32) {
    %c0_i32 = arith.constant 0 : i32
    %c0_i32_0 = arith.constant 0 : i32
    %c0_i32_1 = arith.constant 0 : i32
    return %c0_i32, %c0_i32_0 : i32, i32
  }
  func.func @transform_5(%arg0: i32) -> (i32, i32) {
    %c0_i32 = arith.constant 0 : i32
    %c0_i32_0 = arith.constant 0 : i32
    %c0_i32_1 = arith.constant 0 : i32
    return %c0_i32, %c0_i32_0 : i32, i32
  }
  func.func @transform_6(%arg0: i32) -> (i32, i32) {
    %c0_i32 = arith.constant 0 : i32
    %c0_i32_0 = arith.constant 0 : i32
    %c0_i32_1 = arith.constant 0 : i32
    return %c0_i32, %c0_i32_0 : i32, i32
  }
  func.func @transform_7(%arg0: i32) -> (i32, i32) {
    %c0_i32 = arith.constant 0 : i32
    %c0_i32_0 = arith.constant 0 : i32
    %c0_i32_1 = arith.constant 0 : i32
    return %c0_i32, %c0_i32_0 : i32, i32
  }
  func.func @transform_8(%arg0: i32) -> (i32, i32) {
    %c0_i32 = arith.constant 0 : i32
    %c0_i32_0 = arith.constant 0 : i32
    %c0_i32_1 = arith.constant 0 : i32
    return %c0_i32, %c0_i32_0 : i32, i32
  }
  func.func @transform_9(%arg0: i32) -> (i32, i32) {
    %c0_i32 = arith.constant 0 : i32
    %c0_i32_0 = arith.constant 0 : i32
    %c0_i32_1 = arith.constant 0 : i32
    return %c0_i32, %c0_i32_0 : i32, i32
  }
  func.func @transform_10(%arg0: i32) -> (i32, i32) {
    %c0_i32 = arith.constant 0 : i32
    %c0_i32_0 = arith.constant 0 : i32
    %c0_i32_1 = arith.constant 0 : i32
    return %c0_i32, %c0_i32_0 : i32, i32
  }
  func.func @transform_11(%arg0: i32) -> (i32, i32) {
    %c0_i32 = arith.constant 0 : i32
    %c0_i32_0 = arith.constant 0 : i32
    %c0_i32_1 = arith.constant 0 : i32
    return %c0_i32, %c0_i32_0 : i32, i32
  }
  func.func @transform_12(%arg0: i32) -> (i32, i32) {
    %c0_i32 = arith.constant 0 : i32
    %c0_i32_0 = arith.constant 0 : i32
    %c0_i32_1 = arith.constant 0 : i32
    return %c0_i32, %c0_i32_0 : i32, i32
  }
  func.func @transform_13(%arg0: i32) -> (i32, i32) {
    %c0_i32 = arith.constant 0 : i32
    %c0_i32_0 = arith.constant 0 : i32
    %c0_i32_1 = arith.constant 0 : i32
    return %c0_i32, %c0_i32_0 : i32, i32
  }
  func.func @transform_14(%arg0: i32) -> (i32, i32) {
    %c0_i32 = arith.constant 0 : i32
    %c0_i32_0 = arith.constant 0 : i32
    %c0_i32_1 = arith.constant 0 : i32
    return %c0_i32, %c0_i32_0 : i32, i32
  }
  func.func @transform_15(%arg0: i32) -> (i32, i32) {
    %c0_i32 = arith.constant 0 : i32
    %c0_i32_0 = arith.constant 0 : i32
    return %arg0, %c0_i32 : i32, i32
  }
}

module attributes {stable_mosaic.version = 11 : i64} {
  func.func @_residual_net_kernel(%arg0: i32, %arg1: memref<128x16xf32, #tpu.memory_space<vmem>>, %arg2: memref<16x32xbf16, #tpu.memory_space<vmem>>, %arg3: memref<1x32xf32, #tpu.memory_space<vmem>>, %arg4: memref<32x32xbf16, #tpu.memory_space<vmem>>, %arg5: memref<1x32xf32, #tpu.memory_space<vmem>>, %arg6: memref<32x32xbf16, #tpu.memory_space<vmem>>, %arg7: memref<1x32xf32, #tpu.memory_space<vmem>>, %arg8: memref<32x64xbf16, #tpu.memory_space<vmem>>, %arg9: memref<1x64xf32, #tpu.memory_space<vmem>>, %arg10: memref<64x64xbf16, #tpu.memory_space<vmem>>, %arg11: memref<1x64xf32, #tpu.memory_space<vmem>>, %arg12: memref<32x64xbf16, #tpu.memory_space<vmem>>, %arg13: memref<1x64xf32, #tpu.memory_space<vmem>>, %arg14: memref<64x128xbf16, #tpu.memory_space<vmem>>, %arg15: memref<1x128xf32, #tpu.memory_space<vmem>>, %arg16: memref<128x128xf32, #tpu.memory_space<vmem>>) attributes {dimension_semantics = [#tpu.dimension_semantics<parallel>], iteration_bounds = array<i64: 2>, scalar_prefetch = 0 : i64, scratch_operands = 0 : i64, tpu.core_type = #tpu.core_type<tc>, window_params = [{transform_indices = @transform_0, window_bounds = array<i64: 128, 16>}, {pipeline_mode = #tpu.pipeline_mode<synchronous>, transform_indices = @transform_1, window_bounds = array<i64: 16, 32>}, {pipeline_mode = #tpu.pipeline_mode<synchronous>, transform_indices = @transform_2, window_bounds = array<i64: 1, 32>}, {pipeline_mode = #tpu.pipeline_mode<synchronous>, transform_indices = @transform_3, window_bounds = array<i64: 32, 32>}, {pipeline_mode = #tpu.pipeline_mode<synchronous>, transform_indices = @transform_4, window_bounds = array<i64: 1, 32>}, {pipeline_mode = #tpu.pipeline_mode<synchronous>, transform_indices = @transform_5, window_bounds = array<i64: 32, 32>}, {pipeline_mode = #tpu.pipeline_mode<synchronous>, transform_indices = @transform_6, window_bounds = array<i64: 1, 32>}, {pipeline_mode = #tpu.pipeline_mode<synchronous>, transform_indices = @transform_7, window_bounds = array<i64: 32, 64>}, {pipeline_mode = #tpu.pipeline_mode<synchronous>, transform_indices = @transform_8, window_bounds = array<i64: 1, 64>}, {pipeline_mode = #tpu.pipeline_mode<synchronous>, transform_indices = @transform_9, window_bounds = array<i64: 64, 64>}, {pipeline_mode = #tpu.pipeline_mode<synchronous>, transform_indices = @transform_10, window_bounds = array<i64: 1, 64>}, {pipeline_mode = #tpu.pipeline_mode<synchronous>, transform_indices = @transform_11, window_bounds = array<i64: 32, 64>}, {pipeline_mode = #tpu.pipeline_mode<synchronous>, transform_indices = @transform_12, window_bounds = array<i64: 1, 64>}, {pipeline_mode = #tpu.pipeline_mode<synchronous>, transform_indices = @transform_13, window_bounds = array<i64: 64, 128>}, {pipeline_mode = #tpu.pipeline_mode<synchronous>, transform_indices = @transform_14, window_bounds = array<i64: 1, 128>}, {transform_indices = @transform_15, window_bounds = array<i64: 128, 128>}]} {
    %c0 = arith.constant 0 : index
    %c0_0 = arith.constant 0 : index
    %0 = vector.load %arg1[%c0, %c0_0] : memref<128x16xf32, #tpu.memory_space<vmem>>, vector<128x16xf32>
    %1 = arith.truncf %0 : vector<128x16xf32> to vector<128x16xbf16>
    %c0_1 = arith.constant 0 : index
    %c0_2 = arith.constant 0 : index
    %2 = vector.load %arg2[%c0_1, %c0_2] : memref<16x32xbf16, #tpu.memory_space<vmem>>, vector<16x32xbf16>
    %cst = arith.constant dense<0.000000e+00> : vector<128x32xf32>
    %3 = tpu.matmul %1, %2, %cst {dimension_numbers = #tpu.dot_dimension_numbers<[1], [0], [0], [1], [0, 0, 1, 1], [], []>} : vector<128x16xbf16>, vector<16x32xbf16>, vector<128x32xf32> -> vector<128x32xf32>
    %c0_3 = arith.constant 0 : index
    %c0_4 = arith.constant 0 : index
    %4 = vector.load %arg3[%c0_3, %c0_4] : memref<1x32xf32, #tpu.memory_space<vmem>>, vector<1x32xf32>
    %5 = vector.broadcast %4 : vector<1x32xf32> to vector<128x32xf32>
    %6 = arith.addf %3, %5 : vector<128x32xf32>
    %cst_5 = arith.constant 0.000000e+00 : f32
    %7 = vector.broadcast %cst_5 : f32 to vector<128x32xf32>
    %8 = arith.maximumf %6, %7 : vector<128x32xf32>
    %9 = arith.truncf %8 : vector<128x32xf32> to vector<128x32xbf16>
    %c0_6 = arith.constant 0 : index
    %c0_7 = arith.constant 0 : index
    %10 = vector.load %arg4[%c0_6, %c0_7] : memref<32x32xbf16, #tpu.memory_space<vmem>>, vector<32x32xbf16>
    %cst_8 = arith.constant dense<0.000000e+00> : vector<128x32xf32>
    %11 = tpu.matmul %9, %10, %cst_8 {dimension_numbers = #tpu.dot_dimension_numbers<[1], [0], [0], [1], [0, 0, 1, 1], [], []>} : vector<128x32xbf16>, vector<32x32xbf16>, vector<128x32xf32> -> vector<128x32xf32>
    %c0_9 = arith.constant 0 : index
    %c0_10 = arith.constant 0 : index
    %12 = vector.load %arg5[%c0_9, %c0_10] : memref<1x32xf32, #tpu.memory_space<vmem>>, vector<1x32xf32>
    %13 = vector.broadcast %12 : vector<1x32xf32> to vector<128x32xf32>
    %14 = arith.addf %11, %13 : vector<128x32xf32>
    %cst_11 = arith.constant 0.000000e+00 : f32
    %15 = vector.broadcast %cst_11 : f32 to vector<128x32xf32>
    %16 = arith.maximumf %14, %15 : vector<128x32xf32>
    %17 = arith.truncf %16 : vector<128x32xf32> to vector<128x32xbf16>
    %c0_12 = arith.constant 0 : index
    %c0_13 = arith.constant 0 : index
    %18 = vector.load %arg6[%c0_12, %c0_13] : memref<32x32xbf16, #tpu.memory_space<vmem>>, vector<32x32xbf16>
    %cst_14 = arith.constant dense<0.000000e+00> : vector<128x32xf32>
    %19 = tpu.matmul %17, %18, %cst_14 {dimension_numbers = #tpu.dot_dimension_numbers<[1], [0], [0], [1], [0, 0, 1, 1], [], []>} : vector<128x32xbf16>, vector<32x32xbf16>, vector<128x32xf32> -> vector<128x32xf32>
    %c0_15 = arith.constant 0 : index
    %c0_16 = arith.constant 0 : index
    %20 = vector.load %arg7[%c0_15, %c0_16] : memref<1x32xf32, #tpu.memory_space<vmem>>, vector<1x32xf32>
    %21 = vector.broadcast %20 : vector<1x32xf32> to vector<128x32xf32>
    %22 = arith.addf %19, %21 : vector<128x32xf32>
    %23 = arith.addf %22, %8 : vector<128x32xf32>
    %cst_17 = arith.constant 0.000000e+00 : f32
    %24 = vector.broadcast %cst_17 : f32 to vector<128x32xf32>
    %25 = arith.maximumf %23, %24 : vector<128x32xf32>
    %26 = arith.truncf %25 : vector<128x32xf32> to vector<128x32xbf16>
    %c0_18 = arith.constant 0 : index
    %c0_19 = arith.constant 0 : index
    %27 = vector.load %arg8[%c0_18, %c0_19] : memref<32x64xbf16, #tpu.memory_space<vmem>>, vector<32x64xbf16>
    %cst_20 = arith.constant dense<0.000000e+00> : vector<128x64xf32>
    %28 = tpu.matmul %26, %27, %cst_20 {dimension_numbers = #tpu.dot_dimension_numbers<[1], [0], [0], [1], [0, 0, 1, 1], [], []>} : vector<128x32xbf16>, vector<32x64xbf16>, vector<128x64xf32> -> vector<128x64xf32>
    %c0_21 = arith.constant 0 : index
    %c0_22 = arith.constant 0 : index
    %29 = vector.load %arg9[%c0_21, %c0_22] : memref<1x64xf32, #tpu.memory_space<vmem>>, vector<1x64xf32>
    %30 = vector.broadcast %29 : vector<1x64xf32> to vector<128x64xf32>
    %31 = arith.addf %28, %30 : vector<128x64xf32>
    %cst_23 = arith.constant 0.000000e+00 : f32
    %32 = vector.broadcast %cst_23 : f32 to vector<128x64xf32>
    %33 = arith.maximumf %31, %32 : vector<128x64xf32>
    %34 = arith.truncf %33 : vector<128x64xf32> to vector<128x64xbf16>
    %c0_24 = arith.constant 0 : index
    %c0_25 = arith.constant 0 : index
    %35 = vector.load %arg10[%c0_24, %c0_25] : memref<64x64xbf16, #tpu.memory_space<vmem>>, vector<64x64xbf16>
    %cst_26 = arith.constant dense<0.000000e+00> : vector<128x64xf32>
    %36 = tpu.matmul %34, %35, %cst_26 {dimension_numbers = #tpu.dot_dimension_numbers<[1], [0], [0], [1], [0, 0, 1, 1], [], []>} : vector<128x64xbf16>, vector<64x64xbf16>, vector<128x64xf32> -> vector<128x64xf32>
    %c0_27 = arith.constant 0 : index
    %c0_28 = arith.constant 0 : index
    %37 = vector.load %arg11[%c0_27, %c0_28] : memref<1x64xf32, #tpu.memory_space<vmem>>, vector<1x64xf32>
    %38 = vector.broadcast %37 : vector<1x64xf32> to vector<128x64xf32>
    %39 = arith.addf %36, %38 : vector<128x64xf32>
    %40 = arith.truncf %25 : vector<128x32xf32> to vector<128x32xbf16>
    %c0_29 = arith.constant 0 : index
    %c0_30 = arith.constant 0 : index
    %41 = vector.load %arg12[%c0_29, %c0_30] : memref<32x64xbf16, #tpu.memory_space<vmem>>, vector<32x64xbf16>
    %cst_31 = arith.constant dense<0.000000e+00> : vector<128x64xf32>
    %42 = tpu.matmul %40, %41, %cst_31 {dimension_numbers = #tpu.dot_dimension_numbers<[1], [0], [0], [1], [0, 0, 1, 1], [], []>} : vector<128x32xbf16>, vector<32x64xbf16>, vector<128x64xf32> -> vector<128x64xf32>
    %c0_32 = arith.constant 0 : index
    %c0_33 = arith.constant 0 : index
    %43 = vector.load %arg13[%c0_32, %c0_33] : memref<1x64xf32, #tpu.memory_space<vmem>>, vector<1x64xf32>
    %44 = vector.broadcast %43 : vector<1x64xf32> to vector<128x64xf32>
    %45 = arith.addf %42, %44 : vector<128x64xf32>
    %46 = arith.addf %39, %45 : vector<128x64xf32>
    %cst_34 = arith.constant 0.000000e+00 : f32
    %47 = vector.broadcast %cst_34 : f32 to vector<128x64xf32>
    %48 = arith.maximumf %46, %47 : vector<128x64xf32>
    %49 = arith.truncf %48 : vector<128x64xf32> to vector<128x64xbf16>
    %c0_35 = arith.constant 0 : index
    %c0_36 = arith.constant 0 : index
    %50 = vector.load %arg14[%c0_35, %c0_36] : memref<64x128xbf16, #tpu.memory_space<vmem>>, vector<64x128xbf16>
    %cst_37 = arith.constant dense<0.000000e+00> : vector<128x128xf32>
    %51 = tpu.matmul %49, %50, %cst_37 {dimension_numbers = #tpu.dot_dimension_numbers<[1], [0], [0], [1], [0, 0, 1, 1], [], []>} : vector<128x64xbf16>, vector<64x128xbf16>, vector<128x128xf32> -> vector<128x128xf32>
    %c0_38 = arith.constant 0 : index
    %c0_39 = arith.constant 0 : index
    %52 = vector.load %arg15[%c0_38, %c0_39] : memref<1x128xf32, #tpu.memory_space<vmem>>, vector<1x128xf32>
    %53 = vector.broadcast %52 : vector<1x128xf32> to vector<128x128xf32>
    %54 = arith.addf %51, %53 : vector<128x128xf32>
    %c0_40 = arith.constant 0 : index
    %c0_41 = arith.constant 0 : index
    %55 = vector.load %arg16[%c0_40, %c0_41] : memref<128x128xf32, #tpu.memory_space<vmem>>, vector<128x128xf32>
    tpu.vector_store %arg16[%c0_40, %c0_41], %54 {strides = array<i32>} : memref<128x128xf32, #tpu.memory_space<vmem>>, vector<128x128xf32>,
    return
  }
  func.func @transform_0(%arg0: i32) -> (i32, i32) {
    %c0_i32 = arith.constant 0 : i32
    %c0_i32_0 = arith.constant 0 : i32
    return %arg0, %c0_i32 : i32, i32
  }
  func.func @transform_1(%arg0: i32) -> (i32, i32) {
    %c0_i32 = arith.constant 0 : i32
    %c0_i32_0 = arith.constant 0 : i32
    %c0_i32_1 = arith.constant 0 : i32
    return %c0_i32, %c0_i32_0 : i32, i32
  }
  func.func @transform_2(%arg0: i32) -> (i32, i32) {
    %c0_i32 = arith.constant 0 : i32
    %c0_i32_0 = arith.constant 0 : i32
    %c0_i32_1 = arith.constant 0 : i32
    return %c0_i32, %c0_i32_0 : i32, i32
  }
  func.func @transform_3(%arg0: i32) -> (i32, i32) {
    %c0_i32 = arith.constant 0 : i32
    %c0_i32_0 = arith.constant 0 : i32
    %c0_i32_1 = arith.constant 0 : i32
    return %c0_i32, %c0_i32_0 : i32, i32
  }
  func.func @transform_4(%arg0: i32) -> (i32, i32) {
    %c0_i32 = arith.constant 0 : i32
    %c0_i32_0 = arith.constant 0 : i32
    %c0_i32_1 = arith.constant 0 : i32
    return %c0_i32, %c0_i32_0 : i32, i32
  }
  func.func @transform_5(%arg0: i32) -> (i32, i32) {
    %c0_i32 = arith.constant 0 : i32
    %c0_i32_0 = arith.constant 0 : i32
    %c0_i32_1 = arith.constant 0 : i32
    return %c0_i32, %c0_i32_0 : i32, i32
  }
  func.func @transform_6(%arg0: i32) -> (i32, i32) {
    %c0_i32 = arith.constant 0 : i32
    %c0_i32_0 = arith.constant 0 : i32
    %c0_i32_1 = arith.constant 0 : i32
    return %c0_i32, %c0_i32_0 : i32, i32
  }
  func.func @transform_7(%arg0: i32) -> (i32, i32) {
    %c0_i32 = arith.constant 0 : i32
    %c0_i32_0 = arith.constant 0 : i32
    %c0_i32_1 = arith.constant 0 : i32
    return %c0_i32, %c0_i32_0 : i32, i32
  }
  func.func @transform_8(%arg0: i32) -> (i32, i32) {
    %c0_i32 = arith.constant 0 : i32
    %c0_i32_0 = arith.constant 0 : i32
    %c0_i32_1 = arith.constant 0 : i32
    return %c0_i32, %c0_i32_0 : i32, i32
  }
  func.func @transform_9(%arg0: i32) -> (i32, i32) {
    %c0_i32 = arith.constant 0 : i32
    %c0_i32_0 = arith.constant 0 : i32
    %c0_i32_1 = arith.constant 0 : i32
    return %c0_i32, %c0_i32_0 : i32, i32
  }
  func.func @transform_10(%arg0: i32) -> (i32, i32) {
    %c0_i32 = arith.constant 0 : i32
    %c0_i32_0 = arith.constant 0 : i32
    %c0_i32_1 = arith.constant 0 : i32
    return %c0_i32, %c0_i32_0 : i32, i32
  }
  func.func @transform_11(%arg0: i32) -> (i32, i32) {
    %c0_i32 = arith.constant 0 : i32
    %c0_i32_0 = arith.constant 0 : i32
    %c0_i32_1 = arith.constant 0 : i32
    return %c0_i32, %c0_i32_0 : i32, i32
  }
  func.func @transform_12(%arg0: i32) -> (i32, i32) {
    %c0_i32 = arith.constant 0 : i32
    %c0_i32_0 = arith.constant 0 : i32
    %c0_i32_1 = arith.constant 0 : i32
    return %c0_i32, %c0_i32_0 : i32, i32
  }
  func.func @transform_13(%arg0: i32) -> (i32, i32) {
    %c0_i32 = arith.constant 0 : i32
    %c0_i32_0 = arith.constant 0 : i32
    %c0_i32_1 = arith.constant 0 : i32
    return %c0_i32, %c0_i32_0 : i32, i32
  }
  func.func @transform_14(%arg0: i32) -> (i32, i32) {
    %c0_i32 = arith.constant 0 : i32
    %c0_i32_0 = arith.constant 0 : i32
    %c0_i32_1 = arith.constant 0 : i32
    return %c0_i32, %c0_i32_0 : i32, i32
  }
  func.func @transform_15(%arg0: i32) -> (i32, i32) {
    %c0_i32 = arith.constant 0 : i32
    %c0_i32_0 = arith.constant 0 : i32
    return %arg0, %c0_i32 : i32, i32
  }
}

</mosaic_0001>

<bundles_post_ra>
// kernel: tpu_custom_call.1
= control target key start
LH: loop header
LB: loop body
LE: loop exit
PB: predicated region body
PF: predicated region fallthrough
CT: control target
= control target key end

     0   :  { %s2247_s0 = inlined_call_operand.vmem [shape: f32[256,16], index: 0, kind: input, shape index: {}]   ;;  %s2248_s1 = inlined_call_operand.vmem [shape: bf16[16,32], index: 1, kind: input, shape index: {}]   ;;  %s2249_s2 = inlined_call_operand.vmem [shape: f32[1,32], index: 2, kind: input, shape index: {}]   ;;  %s2250_s3 = inlined_call_operand.vmem [shape: bf16[32,32], index: 3, kind: input, shape index: {}]   ;;  %s2251_s4 = inlined_call_operand.vmem [shape: f32[1,32], index: 4, kind: input, shape index: {}]   ;;  %s2252_s5 = inlined_call_operand.vmem [shape: bf16[32,32], index: 5, kind: input, shape index: {}]   ;;  %s2253_s6 = inlined_call_operand.vmem [shape: f32[1,32], index: 6, kind: input, shape index: {}]   ;;  %s2254_s7 = inlined_call_operand.vmem [shape: bf16[32,64], index: 7, kind: input, shape index: {}]   ;;  %s2255_s8 = inlined_call_operand.vmem [shape: f32[1,64], index: 8, kind: input, shape index: {}]   ;;  %s2256_s9 = inlined_call_operand.vmem [shape: bf16[64,64], index: 9, kind: input, shape index: {}]   ;;  %s2257_s10 = inlined_call_operand.vmem [shape: f32[1,64], index: 10, kind: input, shape index: {}]   ;;  %s2258_s11 = inlined_call_operand.vmem [shape: bf16[32,64], index: 11, kind: input, shape index: {}]   ;;  %s2259_s12 = inlined_call_operand.vmem [shape: f32[1,64], index: 12, kind: input, shape index: {}]   ;;  %s2260_s13 = inlined_call_operand.vmem [shape: bf16[64,128], index: 13, kind: input, shape index: {}]   ;;  %s2261_s14 = inlined_call_operand.vmem [shape: f32[1,128], index: 14, kind: input, shape index: {}]   ;;  %s2262_s15 = inlined_call_operand.hbm [shape: f32[256,128], index: 15, kind: output, shape index: {}]  }
   0x1   :  { %2264 = sst [smem:[#allocation6_spill]] %s2247_s0 }
   0x2   :  { %2265 = sst [smem:[#allocation7_spill]] %s2248_s1 }
   0x3   :  { %2266 = sst [smem:[#allocation8_spill]] %s2249_s2 }
   0x4   :  { %2267 = sst [smem:[#allocation9_spill]] %s2250_s3 }
   0x5   :  { %20 = vsyncpa [#allocation3], 0 }
   0x6   :  { %22 = vsyncpa [#allocation3 + $0x1], 0  ;;  %s1774_s18 = smov 0   ;;  %s1776_s19 = smov 0  }
   0x7   :  { %s1778_s20 = smov 0   ;;  %s1780_s21 = smov 0  }
   0x8 LB: > { %s1795_s22 = sadd.s32 4294967295, %s1690_s21   ;;  %s1421_s23 = sadd.s32 4294967294, %s1690_s21   ;;  %s1690_s21 = sphi %s1780_s21, %s2280_s21   ;;  %s1686_s20 = sphi %s1778_s20, %s2279_s20   ;;  %s1682_s19 = sphi %s1776_s19, %s2278_s19   ;;  %s1678_s18 = sphi %s1774_s18, %s2277_s18  }
   0x9   : > { %s1799_s24 = sadd.s32 1, %s1690_s21   ;;  %s355_s25 = sadd.s32 1, %s1686_s20 }
   0xa   : > { %s352_s26 = ssub.s32 %s1690_s21, %s1799_s24  ;;  %p365_p0 = scmp.ne.s32.totalorder %s1686_s20, %s1682_s19 }
   0xb   : > { %p353_p1 = scmp.eq.s32.totalorder %s352_s26, 0  ;;  %p366_p2 = scmp.eq.s32.totalorder %s1795_s22, 1 }
   0xc   : > { %p371_p3 = scmp.ne.s32.totalorder %s1682_s19, %s1678_s18  ;;  %p372_p4 = scmp.eq.s32.totalorder %s1421_s23, 1 }
   0xd   : > { %s1810_s27 = scalar_select %p353_p1, %s1686_s20, %s355_s25  }
   0xe   : > { %p1812_p5 = por %p366_p2, %p365_p0  ;;  %p1816_p6 = por %p372_p4, %p371_p3 }
   0xf   : > { %2268 = sst [smem:[#allocation5_spill]] %s1810_s27  ;;  %p1424_p7 = scmp.ge.s32.totalorder %s1690_s21, 1 }
  0x10   : > { %p441_p8 = scmp.lt.s32.totalorder %s1690_s21, 3 }
  0x12   : > { %p442_p9 = pnand %p1424_p7, %p441_p8 }
  0x13   : > { %s2271_s1 = sld [smem:[#allocation7_spill]] (!%p442_p9)  ;;  %s1426_s17 = sshll.u32 (!%p442_p9), %s1795_s22, 4 }
  0x14   : > { %445 = sbr.rel (%p442_p9) target bundleno = 1011 (0x3f3), region = 80  ;;  %p490_p10 = scmp.lt.s32.totalorder (!%p442_p9), %s1426_s17, 31 }
  0x15   : > { %s2272_s0 = sld [smem:[#allocation6_spill]] (!%p442_p9)  ;;  %s1574_s30 = sshll.u32 (!%p442_p9), %s1795_s22, 7 }
  0x16   : > { %s2273_s3 = sld [smem:[#allocation9_spill]] (!%p442_p9)  ;;  %s1355_s25 = scalar_lea.hbm (!%p442_p9), %s2262_s15, %s1574_s30 }
  0x17   : > { %s2274_s2 = sld [smem:[#allocation8_spill]] (!%p442_p9)  ;;  %s1648_s30 = scalar_lea.hbm (!%p442_p9), %s2262_s15, 256 }
  0x19   : > { %v1557_v0 = vld [vmem:[%s2271_s1] sm:$0xff]  ;;  %s2282_s17 = smov (!%p490_p10, %s1426_s17), 31  ;;  %vm533_vm0 = vcmask 130048   ;;  %vm651_vm1 = vcmask 261120   ;;  %vm1035_vm2 = vcmask 523264  }
  0x1a   : > { %565 = vmatpush.bf16.msra.mxu0 %v1557_v0  ;;  %1575 = vmatpush.bf16.msra.mxu3 %v1557_v0  ;;  %s1427_s23 = sshll.u32 %s2282_s17, 3  ;;  %s2263_s17 = sand.u32 1, %s1682_s19  }
  0x1b   : > { %s1829_s27 = scalar_lea.vmem %s2272_s0, %s1427_s23  ;;  %s1425_s23 = sshll.u32 %s2263_s17, 7 }
  0x1c   : > { %v497_v1 = vld [vmem:[%s1829_s27] sm:$0xff]  ;;  %v498_v2 = vld [vmem:[%s1829_s27 + $0x8] sm:$0xff]  ;;  %v499_v4 = vld [vmem:[%s1829_s27 + $0x10] sm:$0xff]  ;;  %s1358_s17 = sshll.u32 %s1355_s25, 4  ;;  %s2275_s0 = sand.u32 1, %s1682_s19   ;;  %s1359_s17 = int_to_ptr.hbm [resolvable:$true] %s1358_s17 }
  0x1d   : > { %v513_v3 = vpack.c.bf16 %v498_v2, %v497_v1  ;;  %v500_v5 = vld [vmem:[%s1829_s27 + $0x18] sm:$0xff]  ;;  %v501_v7 = vld [vmem:[%s1829_s27 + $0x20] sm:$0xff]  ;;  %v502_v8 = vld [vmem:[%s1829_s27 + $0x28] sm:$0xff]  ;;  %s1344_s1 = scalar_lea.sflag [#allocation3], %s2275_s0 }
  0x1e   : > { %v514_v6 = vpack.c.bf16 %v500_v5, %v499_v4  ;;  %v515_v9 = vpack.c.bf16 %v502_v8, %v501_v7  ;;  %v503_v10 = vld [vmem:[%s1829_s27 + $0x30] sm:$0xff]  ;;  %v504_v11 = vld [vmem:[%s1829_s27 + $0x38] sm:$0xff]  ;;  %v505_v13 = vld [vmem:[%s1829_s27 + $0x40] sm:$0xff] }
  0x1f   : > { %1432 = vmatmul.msk.bf16.vlgmr.msra.gmra.mxu0 %vm533_vm0, %v513_v3  ;;  %v516_v12 = vpack.c.bf16 %v504_v11, %v503_v10  ;;  %v506_v14 = vld [vmem:[%s1829_s27 + $0x48] sm:$0xff]  ;;  %v511_v16 = vld [vmem:[%s1829_s27 + $0x70] sm:$0xff]  ;;  %v512_v17 = vld [vmem:[%s1829_s27 + $0x78] sm:$0xff] }
  0x20   : > { %v517_v15 = vpack.c.bf16 %v506_v14, %v505_v13  ;;  %v520_v18 = vpack.c.bf16 %v512_v17, %v511_v16  ;;  %v507_v19 = vld [vmem:[%s1829_s27 + $0x50] sm:$0xff]  ;;  %v508_v20 = vld [vmem:[%s1829_s27 + $0x58] sm:$0xff]  ;;  %v509_v22 = vld [vmem:[%s1829_s27 + $0x60] sm:$0xff] }
  0x21   : > { %v518_v21 = vpack.c.bf16 %v508_v20, %v507_v19  ;;  %v510_v23 = vld [vmem:[%s1829_s27 + $0x68] sm:$0xff]  ;;  %v1558_v26 = vld [vmem:[%s2273_s3] sm:$0xff]  ;;  %s2195_s27 = scalar_lea.vmem [#allocation2], %s1425_s23 }
  0x22   : > { %1439 = vmatmul.msk.bf16.vlgmr.msra.gmra.mxu3 %vm533_vm0, %v520_v18  ;;  %v519_v24 = vpack.c.bf16 %v510_v23, %v509_v22  ;;  %v1559_v25 = vld [vmem:[%s2273_s3 + $0x8] sm:$0xff]  ;;  %v1864_v28 = vld [vmem:[%s2274_s2] ss:$0 sm:$0xff]  ;;  %s1356_s26 = sshll.u32 %s2195_s27, 4  ;;  %s1642_s2 = sshra.s32 %s1359_s17, 4  ;;  %s1357_s26 = int_to_ptr.vmem [resolvable:$true] %s1356_s26  ;;  %s1643_s2 = int_to_ptr.hbm [resolvable:$true] %s1642_s2 }
  0x23   : > { %682 = vmatpush.bf16.msra.mxu1 %v1559_v25  ;;  %1576 = vmatpush.bf16.msrb.mxu3 %v1559_v25  ;;  %v1560_v18 = vld [vmem:[%s2252_s5] sm:$0xff]  ;;  %s1644_s22 = scalar_lea.hbm %s1643_s2, 128  ;;  %p1649_p0 = scmp.lt.s32.totalorder %s1643_s2, %s2262_s15 }
  0x24   : > { %v1979_v23 = vld [vmem:[%s2251_s4] ss:$0 sm:$0xff]  ;;  %p1645_p11 = scmp.ne.s32.totalorder %s1643_s2, %s1644_s22  ;;  %p1650_p1 = scmp.lt.s32.totalorder %s1648_s30, %s1644_s22 }
  0x26   : > { %p1646_p12 = pnand %p1645_p11, %p1812_p5  ;;  %p1651_p2 = por %p1650_p1, %p1649_p0 }
  0x27   : > { %683 = vmatpush.bf16.msra.mxu1 %v1558_v26  ;;  %1577 = vmatpush.bf16.msrb.mxu3 %v1558_v26 }
  0x28   : > { %p1647_p13 = pneg %p1646_p12 }
  0x2a   : > { %p1652_p3 = pnand %p1651_p2, %p1647_p13 }
  0x2f   : > { %1433 = vmatmul.msk.bf16.gmra.mxu0 %vm533_vm0, %v514_v6 }
  0x3f   : > { %1434 = vmatmul.msk.bf16.gmra.mxu0 %vm533_vm0, %v515_v9 }
  0x4f   : > { %1435 = vmatmul.msk.bf16.gmra.mxu0 %vm533_vm0, %v516_v12 }
  0x5f   : > { %1436 = vmatmul.msk.bf16.gmra.mxu0 %vm533_vm0, %v517_v15  ;;  %v1561_v15 = vld [vmem:[%s2252_s5 + $0x8] sm:$0xff] }
  0x60   : > { %799 = vmatpush.bf16.msra.mxu2 %v1561_v15  ;;  %1578 = vmatpush.bf16.msra.mxu3 %v1561_v15 }
  0x64   : > { %800 = vmatpush.bf16.msra.mxu2 %v1560_v18  ;;  %1579 = vmatpush.bf16.msra.mxu3 %v1560_v18 }
  0x6f   : > { %1437 = vmatmul.msk.bf16.gmra.mxu0 %vm533_vm0, %v518_v21 }
  0x7f   : > { %1438 = vmatmul.msk.bf16.gmra.mxu0 %vm533_vm0, %v519_v24 }
  0x9c   : > { %v567_v27 = vpop.f32.mrf.mxu0 }
  0x9d   : > { %v1867_v29 = vadd.f32 %v1864_v28, %v567_v27 }
  0x9f   : > { %v607_v32 = vmax.f32 %v1867_v29, 0.0 }
  0xa4   : > { %v569_v30 = vpop.f32.mrf.mxu0 }
  0xa5   : > { %v1870_v31 = vadd.f32 %v1864_v28, %v569_v30  ;;  %v602_v9 = vpop.f32.mrf.mxu3 }
  0xa6   : > { %v1961_v16 = vadd.f32 %v1864_v28, %v602_v9 }
  0xa7   : > { %v608_v33 = vmax.f32 %v1870_v31, 0.0 }
  0xa8   : > { %v621_v19 = vmax.f32 %v1961_v16, 0.0 }
  0xa9   : > { %v623_v34 = vpack.c.bf16 %v608_v33, %v607_v32 }
  0xab   : > { %1448 = vmatmul.msk.bf16.vlgmr.msra.gmra.mxu1 %vm651_vm1, %v623_v34 }
  0xac   : > { %v572_v35 = vpop.f32.mrf.mxu0 }
  0xad   : > { %v1880_v36 = vadd.f32 %v1864_v28, %v572_v35  ;;  %v604_v14 = vpop.f32.mrf.mxu3 }
  0xae   : > { %v1964_v17 = vadd.f32 %v1864_v28, %v604_v14 }
  0xaf   : > { %v609_v39 = vmax.f32 %v1880_v36, 0.0 }
  0xb0   : > { %v622_v20 = vmax.f32 %v1964_v17, 0.0 }
  0xb2   : > { %v630_v21 = vpack.c.bf16 %v622_v20, %v621_v19 }
  0xb4   : > { %v574_v37 = vpop.f32.mrf.mxu0 }
  0xb5   : > { %v1883_v38 = vadd.f32 %v1864_v28, %v574_v37 }
  0xb7   : > { %v610_v40 = vmax.f32 %v1883_v38, 0.0 }
  0xb9   : > { %v624_v41 = vpack.c.bf16 %v610_v40, %v609_v39 }
  0xbb   : > { %1449 = vmatmul.msk.bf16.gmra.mxu1 %vm651_vm1, %v624_v41 }
  0xbc   : > { %v577_v42 = vpop.f32.mrf.mxu0 }
  0xbd   : > { %v1893_v43 = vadd.f32 %v1864_v28, %v577_v42 }
  0xbf   : > { %v611_v46 = vmax.f32 %v1893_v43, 0.0  ;;  %v1566_v43 = vld [vmem:[%s2256_s9 + $0x10] sm:$0xff] }
  0xc4   : > { %v579_v44 = vpop.f32.mrf.mxu0 }
  0xc5   : > { %v1896_v45 = vadd.f32 %v1864_v28, %v579_v44 }
  0xc7   : > { %v612_v47 = vmax.f32 %v1896_v45, 0.0 }
  0xc9   : > { %v625_v48 = vpack.c.bf16 %v612_v47, %v611_v46 }
  0xcb   : > { %1450 = vmatmul.msk.bf16.gmra.mxu1 %vm651_vm1, %v625_v48 }
  0xcc   : > { %v582_v49 = vpop.f32.mrf.mxu0 }
  0xcd   : > { %v1906_v50 = vadd.f32 %v1864_v28, %v582_v49 }
  0xcf   : > { %v613_v53 = vmax.f32 %v1906_v50, 0.0 }
  0xd4   : > { %v584_v51 = vpop.f32.mrf.mxu0 }
  0xd5   : > { %v1909_v52 = vadd.f32 %v1864_v28, %v584_v51 }
  0xd7   : > { %v614_v54 = vmax.f32 %v1909_v52, 0.0 }
  0xd9   : > { %v626_v55 = vpack.c.bf16 %v614_v54, %v613_v53 }
  0xdb   : > { %1451 = vmatmul.msk.bf16.gmra.mxu1 %vm651_vm1, %v626_v55 }
  0xdc   : > { %v587_v56 = vpop.f32.mrf.mxu0 }
  0xdd   : > { %v1919_v57 = vadd.f32 %v1864_v28, %v587_v56 }
  0xdf   : > { %v615_v60 = vmax.f32 %v1919_v57, 0.0 }
  0xe4   : > { %v589_v58 = vpop.f32.mrf.mxu0 }
  0xe5   : > { %v1922_v59 = vadd.f32 %v1864_v28, %v589_v58 }
  0xe7   : > { %v616_v61 = vmax.f32 %v1922_v59, 0.0 }
  0xe9   : > { %v627_v62 = vpack.c.bf16 %v616_v61, %v615_v60 }
  0xeb   : > { %1452 = vmatmul.msk.bf16.gmra.mxu1 %vm651_vm1, %v627_v62 }
  0xec   : > { %v592_v63 = vpop.f32.mrf.mxu0 }
  0xed   : > { %v1932_v0 = vadd.f32 %v1864_v28, %v592_v63 }
  0xef   : > { %v617_v3 = vmax.f32 %v1932_v0, 0.0 }
  0xf4   : > { %v594_v1 = vpop.f32.mrf.mxu0 }
  0xf5   : > { %v1935_v2 = vadd.f32 %v1864_v28, %v594_v1 }
  0xf7   : > { %v618_v4 = vmax.f32 %v1935_v2, 0.0 }
  0xf9   : > { %v628_v5 = vpack.c.bf16 %v618_v4, %v617_v3 }
  0xfb   : > { %1453 = vmatmul.msk.bf16.gmra.mxu1 %vm651_vm1, %v628_v5 }
  0xfc   : > { %v597_v6 = vpop.f32.mrf.mxu0 }
  0xfd   : > { %v1945_v7 = vadd.f32 %v1864_v28, %v597_v6 }
  0xff   : > { %v619_v11 = vmax.f32 %v1945_v7, 0.0 }
 0x104   : > { %v599_v8 = vpop.f32.mrf.mxu0 }
 0x105   : > { %v1948_v10 = vadd.f32 %v1864_v28, %v599_v8 }
 0x107   : > { %v620_v12 = vmax.f32 %v1948_v10, 0.0 }
 0x109   : > { %v629_v13 = vpack.c.bf16 %v620_v12, %v619_v11 }
 0x10b   : > { %1454 = vmatmul.msk.bf16.vlgmr.msrb.gmra.mxu3 %vm651_vm1, %v629_v13 }
 0x11b   : > { %1455 = vmatmul.msk.bf16.gmra.mxu3 %vm651_vm1, %v630_v21 }
 0x128   : > { %v685_v22 = vpop.f32.mrf.mxu1 }
 0x129   : > { %v686_v24 = vadd.f32 %v1979_v23, %v685_v22 }
 0x12b   : > { %v725_v27 = vmax.f32 %v686_v24, 0.0 }
 0x130   : > { %v687_v25 = vpop.f32.mrf.mxu1 }
 0x131   : > { %v688_v26 = vadd.f32 %v1979_v23, %v687_v25 }
 0x133   : > { %v726_v28 = vmax.f32 %v688_v26, 0.0 }
 0x135   : > { %v741_v30 = vpack.c.bf16 %v726_v28, %v725_v27 }
 0x137   : > { %1464 = vmatmul.msk.bf16.vlgmr.msra.gmra.mxu2 %vm651_vm1, %v741_v30 }
 0x138   : > { %v690_v34 = vpop.f32.mrf.mxu1 }
 0x139   : > { %v691_v35 = vadd.f32 %v1979_v23, %v690_v34 }
 0x13b   : > { %v727_v42 = vmax.f32 %v691_v35, 0.0 }
 0x140   : > { %v692_v37 = vpop.f32.mrf.mxu1 }
 0x141   : > { %v693_v41 = vadd.f32 %v1979_v23, %v692_v37 }
 0x143   : > { %v728_v44 = vmax.f32 %v693_v41, 0.0 }
 0x145   : > { %v742_v48 = vpack.c.bf16 %v728_v44, %v727_v42  ;;  %v1563_v42 = vld [vmem:[%s2254_s7 + $0x8] sm:$0xff] }
 0x146   : > { %932 = vmatpush.bf16.msrb.mxu3 %v1563_v42  ;;  %v1567_v42 = vld [vmem:[%s2256_s9 + $0x18] sm:$0xff] }
 0x147   : > { %1465 = vmatmul.msk.bf16.gmra.mxu2 %vm651_vm1, %v742_v48  ;;  %1064 = vmatpush.bf16.msrb.mxu0 %v1567_v42 }
 0x148   : > { %v695_v49 = vpop.f32.mrf.mxu1 }
 0x149   : > { %v696_v51 = vadd.f32 %v1979_v23, %v695_v49 }
 0x14b   : > { %v729_v58 = vmax.f32 %v696_v51, 0.0  ;;  %1065 = vmatpush.bf16.msrb.mxu0 %v1566_v43 }
 0x150   : > { %v697_v55 = vpop.f32.mrf.mxu1 }
 0x151   : > { %v698_v56 = vadd.f32 %v1979_v23, %v697_v55 }
 0x153   : > { %v730_v62 = vmax.f32 %v698_v56, 0.0 }
 0x155   : > { %v743_v63 = vpack.c.bf16 %v730_v62, %v729_v58 }
 0x157   : > { %1466 = vmatmul.msk.bf16.gmra.mxu2 %vm651_vm1, %v743_v63  ;;  %v1562_v63 = vld [vmem:[%s2254_s7] sm:$0xff] }
 0x158   : > { %v700_v1 = vpop.f32.mrf.mxu1  ;;  %933 = vmatpush.bf16.msrb.mxu3 %v1562_v63 }
 0x159   : > { %v701_v5 = vadd.f32 %v1979_v23, %v700_v1  ;;  %v1569_v1 = vld [vmem:[%s2258_s11 + $0x8] sm:$0xff] }
 0x15a   : > { %1135 = vmatpush.bf16.msrb.mxu1 %v1569_v1 }
 0x15b   : > { %v731_v9 = vmax.f32 %v701_v5, 0.0 }
 0x160   : > { %v702_v6 = vpop.f32.mrf.mxu1 }
 0x161   : > { %v703_v8 = vadd.f32 %v1979_v23, %v702_v6 }
 0x163   : > { %v732_v13 = vmax.f32 %v703_v8, 0.0  ;;  %v1568_v8 = vld [vmem:[%s2258_s11] sm:$0xff] }
 0x164   : > { %1136 = vmatpush.bf16.msrb.mxu1 %v1568_v8 }
 0x165   : > { %v744_v14 = vpack.c.bf16 %v732_v13, %v731_v9 }
 0x167   : > { %1467 = vmatmul.msk.bf16.gmra.mxu2 %vm651_vm1, %v744_v14 }
 0x168   : > { %v705_v15 = vpop.f32.mrf.mxu1 }
 0x169   : > { %v706_v18 = vadd.f32 %v1979_v23, %v705_v15 }
 0x16b   : > { %v733_v24 = vmax.f32 %v706_v18, 0.0 }
 0x170   : > { %v707_v21 = vpop.f32.mrf.mxu1 }
 0x171   : > { %v708_v22 = vadd.f32 %v1979_v23, %v707_v21  ;;  %v2020_v21 = vld [vmem:[%s2253_s6] ss:$0 sm:$0xff] }
 0x173   : > { %v734_v25 = vmax.f32 %v708_v22, 0.0 }
 0x175   : > { %v745_v26 = vpack.c.bf16 %v734_v25, %v733_v24 }
 0x177   : > { %1468 = vmatmul.msk.bf16.gmra.mxu2 %vm651_vm1, %v745_v26 }
 0x178   : > { %v710_v27 = vpop.f32.mrf.mxu1 }
 0x179   : > { %v711_v28 = vadd.f32 %v1979_v23, %v710_v27 }
 0x17b   : > { %v735_v35 = vmax.f32 %v711_v28, 0.0 }
 0x180   : > { %v712_v30 = vpop.f32.mrf.mxu1 }
 0x181   : > { %v713_v34 = vadd.f32 %v1979_v23, %v712_v30 }
 0x183   : > { %v736_v37 = vmax.f32 %v713_v34, 0.0 }
 0x185   : > { %v746_v41 = vpack.c.bf16 %v736_v37, %v735_v35 }
 0x187   : > { %1469 = vmatmul.msk.bf16.gmra.mxu2 %vm651_vm1, %v746_v41 }
 0x18e   : > { %v715_v44 = vpop.f32.mrf.mxu3 }
 0x18f   : > { %v716_v48 = vadd.f32 %v1979_v23, %v715_v44 }
 0x191   : > { %v737_v55 = vmax.f32 %v716_v48, 0.0 }
 0x196   : > { %v717_v49 = vpop.f32.mrf.mxu3 }
 0x197   : > { %v718_v51 = vadd.f32 %v1979_v23, %v717_v49 }
 0x199   : > { %v738_v56 = vmax.f32 %v718_v51, 0.0 }
 0x19b   : > { %v747_v58 = vpack.c.bf16 %v738_v56, %v737_v55 }
 0x19d   : > { %1470 = vmatmul.msk.bf16.vlgmr.msra.gmra.mxu3 %vm651_vm1, %v747_v58 }
 0x19e   : > { %v720_v62 = vpop.f32.mrf.mxu3 }
 0x19f   : > { %v721_v5 = vadd.f32 %v1979_v23, %v720_v62 }
 0x1a1   : > { %v739_v13 = vmax.f32 %v721_v5, 0.0 }
 0x1a6   : > { %v722_v6 = vpop.f32.mrf.mxu3 }
 0x1a7   : > { %v723_v9 = vadd.f32 %v1979_v23, %v722_v6 }
 0x1a9   : > { %v740_v14 = vmax.f32 %v723_v9, 0.0 }
 0x1ab   : > { %v748_v15 = vpack.c.bf16 %v740_v14, %v739_v13 }
 0x1ad   : > { %1471 = vmatmul.msk.bf16.gmra.mxu3 %vm651_vm1, %v748_v15 }
 0x1ba   : > { %v802_v18 = vpop.f32.mrf.mxu2 }
 0x1bb   : > { %v803_v22 = vadd.f32 %v2020_v21, %v802_v18 }
 0x1bd   : > { %v842_v25 = vadd.f32 %v803_v22, %v607_v32  ;;  %v1565_v22 = vld [vmem:[%s2256_s9 + $0x8] sm:$0xff] }
 0x1be   : > { %1066 = vmatpush.bf16.msrb.mxu0 %v1565_v22 }
 0x1bf   : > { %v858_v27 = vmax.f32 %v842_v25, 0.0 }
 0x1c2   : > { %v804_v24 = vpop.f32.mrf.mxu2 }
 0x1c3   : > { %v805_v23 = vadd.f32 %v2020_v21, %v804_v24 }
 0x1c5   : > { %v843_v26 = vadd.f32 %v805_v23, %v608_v33 }
 0x1c7   : > { %v859_v28 = vmax.f32 %v843_v26, 0.0 }
 0x1c9   : > { %v874_v30 = vpack.c.bf16 %v859_v28, %v858_v27  ;;  %v1564_v28 = vld [vmem:[%s2256_s9] sm:$0xff] }
 0x1ca   : > { %v807_v34 = vpop.f32.mrf.mxu2  ;;  %1067 = vmatpush.bf16.msrb.mxu0 %v1564_v28  ;;  %v1570_v28 = vld [vmem:[%s2260_s13] sm:$0xff] }
 0x1cb   : > { %1480 = vmatmul.msk.bf16.vlgmr.msrb.gmra.mxu3 %vm651_vm1, %v874_v30  ;;  %1520 = vmatmul.msk.bf16.vlgmr.msrb.gmra.mxu1 %vm651_vm1, %v874_v30  ;;  %v808_v35 = vadd.f32 %v2020_v21, %v807_v34 }
 0x1cd   : > { %v844_v29 = vadd.f32 %v808_v35, %v609_v39 }
 0x1cf   : > { %v860_v33 = vmax.f32 %v844_v29, 0.0 }
 0x1d2   : > { %v809_v37 = vpop.f32.mrf.mxu2 }
 0x1d3   : > { %v810_v32 = vadd.f32 %v2020_v21, %v809_v37 }
 0x1d5   : > { %v845_v31 = vadd.f32 %v810_v32, %v610_v40 }
 0x1d7   : > { %v861_v41 = vmax.f32 %v845_v31, 0.0 }
 0x1d9   : > { %v875_v44 = vpack.c.bf16 %v861_v41, %v860_v33 }
 0x1da   : > { %v812_v48 = vpop.f32.mrf.mxu2 }
 0x1db   : > { %1481 = vmatmul.msk.bf16.gmra.mxu3 %vm651_vm1, %v875_v44  ;;  %1521 = vmatmul.msk.bf16.gmra.mxu1 %vm651_vm1, %v875_v44  ;;  %v813_v36 = vadd.f32 %v2020_v21, %v812_v48  ;;  %v2101_v44 = vld [vmem:[%s2255_s8] ss:$0 sm:$0xff] }
 0x1dd   : > { %v846_v38 = vadd.f32 %v813_v36, %v611_v46 }
 0x1df   : > { %v862_v51 = vmax.f32 %v846_v38, 0.0 }
 0x1e2   : > { %v814_v39 = vpop.f32.mrf.mxu2 }
 0x1e3   : > { %v815_v40 = vadd.f32 %v2020_v21, %v814_v39 }
 0x1e5   : > { %v847_v49 = vadd.f32 %v815_v40, %v612_v47 }
 0x1e7   : > { %v863_v55 = vmax.f32 %v847_v49, 0.0 }
 0x1e9   : > { %v876_v56 = vpack.c.bf16 %v863_v55, %v862_v51 }
 0x1ea   : > { %v817_v58 = vpop.f32.mrf.mxu2 }
 0x1eb   : > { %1482 = vmatmul.msk.bf16.gmra.mxu3 %vm651_vm1, %v876_v56  ;;  %1522 = vmatmul.msk.bf16.gmra.mxu1 %vm651_vm1, %v876_v56  ;;  %v818_v62 = vadd.f32 %v2020_v21, %v817_v58  ;;  %v1573_v58 = vld [vmem:[%s2260_s13 + $0x18] sm:$0xff] }
 0x1ec   : > { %1282 = vmatpush.bf16.msrb.mxu2 %v1573_v58 }
 0x1ed   : > { %v848_v45 = vadd.f32 %v818_v62, %v613_v53 }
 0x1ef   : > { %v864_v1 = vmax.f32 %v848_v45, 0.0 }
 0x1f2   : > { %v819_v46 = vpop.f32.mrf.mxu2 }
 0x1f3   : > { %v820_v47 = vadd.f32 %v2020_v21, %v819_v46 }
 0x1f5   : > { %v849_v63 = vadd.f32 %v820_v47, %v614_v54 }
 0x1f7   : > { %v865_v5 = vmax.f32 %v849_v63, 0.0 }
 0x1f9   : > { %v877_v6 = vpack.c.bf16 %v865_v5, %v864_v1 }
 0x1fa   : > { %v822_v8 = vpop.f32.mrf.mxu2 }
 0x1fb   : > { %1483 = vmatmul.msk.bf16.gmra.mxu3 %vm651_vm1, %v877_v6  ;;  %1523 = vmatmul.msk.bf16.gmra.mxu1 %vm651_vm1, %v877_v6  ;;  %v823_v9 = vadd.f32 %v2020_v21, %v822_v8 }
 0x1fd   : > { %v850_v50 = vadd.f32 %v823_v9, %v615_v60 }
 0x1ff   : > { %v866_v54 = vmax.f32 %v850_v50, 0.0 }
 0x202   : > { %v824_v13 = vpop.f32.mrf.mxu2 }
 0x203   : > { %v825_v53 = vadd.f32 %v2020_v21, %v824_v13 }
 0x205   : > { %v851_v52 = vadd.f32 %v825_v53, %v616_v61  ;;  %v1572_v53 = vld [vmem:[%s2260_s13 + $0x10] sm:$0xff] }
 0x206   : > { %1283 = vmatpush.bf16.msrb.mxu2 %v1572_v53 }
 0x207   : > { %v867_v14 = vmax.f32 %v851_v52, 0.0 }
 0x209   : > { %v878_v15 = vpack.c.bf16 %v867_v14, %v866_v54 }
 0x20a   : > { %v827_v18 = vpop.f32.mrf.mxu2 }
 0x20b   : > { %1484 = vmatmul.msk.bf16.gmra.mxu3 %vm651_vm1, %v878_v15  ;;  %1524 = vmatmul.msk.bf16.gmra.mxu1 %vm651_vm1, %v878_v15  ;;  %v828_v57 = vadd.f32 %v2020_v21, %v827_v18 }
 0x20d   : > { %v852_v59 = vadd.f32 %v828_v57, %v617_v3 }
 0x20f   : > { %v868_v25 = vmax.f32 %v852_v59, 0.0  ;;  %v1571_v59 = vld [vmem:[%s2260_s13 + $0x8] sm:$0xff] }
 0x210   : > { %1284 = vmatpush.bf16.msrb.mxu2 %v1571_v59 }
 0x212   : > { %v829_v60 = vpop.f32.mrf.mxu2 }
 0x213   : > { %v830_v61 = vadd.f32 %v2020_v21, %v829_v60 }
 0x214   : > { %1285 = vmatpush.bf16.msrb.mxu2 %v1570_v28 }
 0x215   : > { %v853_v24 = vadd.f32 %v830_v61, %v618_v4 }
 0x217   : > { %v869_v23 = vmax.f32 %v853_v24, 0.0 }
 0x219   : > { %v879_v26 = vpack.c.bf16 %v869_v23, %v868_v25 }
 0x21b   : > { %1485 = vmatmul.msk.bf16.gmra.mxu3 %vm651_vm1, %v879_v26  ;;  %1525 = vmatmul.msk.bf16.gmra.mxu1 %vm651_vm1, %v879_v26 }
 0x220   : > { %v832_v27 = vpop.f32.mrf.mxu3 }
 0x221   : > { %v833_v0 = vadd.f32 %v2020_v21, %v832_v27 }
 0x223   : > { %v854_v2 = vadd.f32 %v833_v0, %v619_v11 }
 0x225   : > { %v870_v34 = vmax.f32 %v854_v2, 0.0 }
 0x228   : > { %v834_v3 = vpop.f32.mrf.mxu3 }
 0x229   : > { %v835_v4 = vadd.f32 %v2020_v21, %v834_v3 }
 0x22b   : > { %v855_v30 = vadd.f32 %v835_v4, %v620_v12 }
 0x22d   : > { %v871_v35 = vmax.f32 %v855_v30, 0.0 }
 0x22f   : > { %v880_v37 = vpack.c.bf16 %v871_v35, %v870_v34 }
 0x230   : > { %v837_v29 = vpop.f32.mrf.mxu3 }
 0x231   : > { %1486 = vmatmul.msk.bf16.gmra.mxu3 %vm651_vm1, %v880_v37  ;;  %1526 = vmatmul.msk.bf16.gmra.mxu1 %vm651_vm1, %v880_v37  ;;  %v838_v32 = vadd.f32 %v2020_v21, %v837_v29 }
 0x233   : > { %v856_v7 = vadd.f32 %v838_v32, %v621_v19 }
 0x235   : > { %v872_v12 = vmax.f32 %v856_v7, 0.0 }
 0x238   : > { %v839_v31 = vpop.f32.mrf.mxu3 }
 0x239   : > { %v840_v11 = vadd.f32 %v2020_v21, %v839_v31 }
 0x23b   : > { %v857_v10 = vadd.f32 %v840_v11, %v622_v20 }
 0x23d   : > { %v873_v33 = vmax.f32 %v857_v10, 0.0 }
 0x23f   : > { %v881_v41 = vpack.c.bf16 %v873_v33, %v872_v12 }
 0x241   : > { %1487 = vmatmul.msk.bf16.gmra.mxu3 %vm651_vm1, %v881_v41  ;;  %1527 = vmatmul.msk.bf16.gmra.mxu1 %vm651_vm1, %v881_v41 }
 0x248   : > { %v1138_v37 = vpop.f32.mrf.mxu1 }
 0x24e   : > { %v935_v42 = vpop.f32.mrf.mxu3 }
 0x24f   : > { %v936_v16 = vadd.f32 %v2101_v44, %v935_v42 }
 0x250   : > { %v1140_v31 = vpop.f32.mrf.mxu1 }
 0x251   : > { %v975_v17 = vmax.f32 %v936_v16, 0.0  ;;  %v2142_v16 = vld [vmem:[%s2257_s10] ss:$0 sm:$0xff] }
 0x256   : > { %v937_v19 = vpop.f32.mrf.mxu3 }
 0x257   : > { %v938_v21 = vadd.f32 %v2101_v44, %v937_v19  ;;  %v2147_v19 = vld [vmem:[%s2259_s12] ss:$0 sm:$0xff] }
 0x258   : > { %v1143_v41 = vpop.f32.mrf.mxu1 }
 0x259   : > { %v976_v20 = vmax.f32 %v938_v21, 0.0 }
 0x25b   : > { %v991_v48 = vpack.c.bf16 %v976_v20, %v975_v17  ;;  %v1139_v17 = vadd.f32 %v2147_v19, %v1138_v37 }
 0x25d   : > { %1504 = vmatmul.msk.bf16.vlgmr.msrb.gmra.mxu0 %vm1035_vm2, %v991_v48  ;;  %v1141_v48 = vadd.f32 %v2147_v19, %v1140_v31 }
 0x25e   : > { %v940_v36 = vpop.f32.mrf.mxu3 }
 0x25f   : > { %v941_v39 = vadd.f32 %v2101_v44, %v940_v36 }
 0x261   : > { %v977_v49 = vmax.f32 %v941_v39, 0.0 }
 0x266   : > { %v942_v38 = vpop.f32.mrf.mxu3 }
 0x267   : > { %v943_v40 = vadd.f32 %v2101_v44, %v942_v38 }
 0x269   : > { %v978_v51 = vmax.f32 %v943_v40, 0.0 }
 0x26b   : > { %v992_v55 = vpack.c.bf16 %v978_v51, %v977_v49 }
 0x26d   : > { %1505 = vmatmul.msk.bf16.gmra.mxu0 %vm1035_vm2, %v992_v55 }
 0x26e   : > { %v945_v56 = vpop.f32.mrf.mxu3 }
 0x26f   : > { %v946_v62 = vadd.f32 %v2101_v44, %v945_v56 }
 0x271   : > { %v979_v45 = vmax.f32 %v946_v62, 0.0  ;;  %v1144_v62 = vadd.f32 %v2147_v19, %v1143_v41 }
 0x276   : > { %v947_v43 = vpop.f32.mrf.mxu3 }
 0x277   : > { %v948_v46 = vadd.f32 %v2101_v44, %v947_v43 }
 0x279   : > { %v980_v47 = vmax.f32 %v948_v46, 0.0 }
 0x27b   : > { %v993_v63 = vpack.c.bf16 %v980_v47, %v979_v45 }
 0x27d   : > { %1506 = vmatmul.msk.bf16.gmra.mxu0 %vm1035_vm2, %v993_v63 }
 0x27e   : > { %v950_v1 = vpop.f32.mrf.mxu3 }
 0x27f   : > { %v951_v5 = vadd.f32 %v2101_v44, %v950_v1 }
 0x281   : > { %v981_v9 = vmax.f32 %v951_v5, 0.0 }
 0x286   : > { %v952_v6 = vpop.f32.mrf.mxu3 }
 0x287   : > { %v953_v8 = vadd.f32 %v2101_v44, %v952_v6 }
 0x289   : > { %v982_v13 = vmax.f32 %v953_v8, 0.0 }
 0x28b   : > { %v994_v50 = vpack.c.bf16 %v982_v13, %v981_v9 }
 0x28d   : > { %1507 = vmatmul.msk.bf16.gmra.mxu0 %vm1035_vm2, %v994_v50 }
 0x28e   : > { %v955_v52 = vpop.f32.mrf.mxu3 }
 0x28f   : > { %v956_v54 = vadd.f32 %v2101_v44, %v955_v52 }
 0x291   : > { %v983_v18 = vmax.f32 %v956_v54, 0.0 }
 0x296   : > { %v957_v14 = vpop.f32.mrf.mxu3 }
 0x297   : > { %v958_v15 = vadd.f32 %v2101_v44, %v957_v14 }
 0x299   : > { %v984_v22 = vmax.f32 %v958_v15, 0.0 }
 0x29b   : > { %v995_v57 = vpack.c.bf16 %v984_v22, %v983_v18 }
 0x29d   : > { %1508 = vmatmul.msk.bf16.gmra.mxu0 %vm1035_vm2, %v995_v57 }
 0x29e   : > { %v960_v60 = vpop.f32.mrf.mxu3 }
 0x29f   : > { %v961_v61 = vadd.f32 %v2101_v44, %v960_v60 }
 0x2a1   : > { %v985_v23 = vmax.f32 %v961_v61, 0.0 }
 0x2a6   : > { %v962_v24 = vpop.f32.mrf.mxu3 }
 0x2a7   : > { %v963_v25 = vadd.f32 %v2101_v44, %v962_v24 }
 0x2a9   : > { %v986_v26 = vmax.f32 %v963_v25, 0.0 }
 0x2ab   : > { %v996_v27 = vpack.c.bf16 %v986_v26, %v985_v23 }
 0x2ad   : > { %1509 = vmatmul.msk.bf16.gmra.mxu0 %vm1035_vm2, %v996_v27 }
 0x2b4   : > { %v965_v0 = vpop.f32.mrf.mxu3 }
 0x2b5   : > { %v966_v3 = vadd.f32 %v2101_v44, %v965_v0 }
 0x2b7   : > { %v987_v30 = vmax.f32 %v966_v3, 0.0 }
 0x2bc   : > { %v967_v2 = vpop.f32.mrf.mxu3 }
 0x2bd   : > { %v968_v4 = vadd.f32 %v2101_v44, %v967_v2 }
 0x2bf   : > { %v988_v34 = vmax.f32 %v968_v4, 0.0 }
 0x2c1   : > { %v997_v35 = vpack.c.bf16 %v988_v34, %v987_v30 }
 0x2c3   : > { %1510 = vmatmul.msk.bf16.gmra.mxu0 %vm1035_vm2, %v997_v35 }
 0x2c4   : > { %v970_v29 = vpop.f32.mrf.mxu3 }
 0x2c5   : > { %v971_v32 = vadd.f32 %v2101_v44, %v970_v29 }
 0x2c7   : > { %v989_v10 = vmax.f32 %v971_v32, 0.0 }
 0x2cc   : > { %v972_v7 = vpop.f32.mrf.mxu3 }
 0x2cd   : > { %v973_v11 = vadd.f32 %v2101_v44, %v972_v7  ;;  %v1145_v44 = vpop.f32.mrf.mxu1 }
 0x2ce   : > { %v1146_v46 = vadd.f32 %v2147_v19, %v1145_v44 }
 0x2cf   : > { %v990_v12 = vmax.f32 %v973_v11, 0.0 }
 0x2d1   : > { %v998_v33 = vpack.c.bf16 %v990_v12, %v989_v10 }
 0x2d3   : > { %1511 = vmatmul.msk.bf16.gmra.mxu0 %vm1035_vm2, %v998_v33 }
 0x2d5   : > { %v1148_v55 = vpop.f32.mrf.mxu1 }
 0x2d6   : > { %v1149_v53 = vadd.f32 %v2147_v19, %v1148_v55 }
 0x2da   : > { %v1069_v42 = vpop.f32.mrf.mxu0 }
 0x2db   : > { %v1070_v21 = vadd.f32 %v2142_v16, %v1069_v42 }
 0x2dd   : > { %v1178_v36 = vadd.f32 %v1139_v17, %v1070_v21  ;;  %v1150_v63 = vpop.f32.mrf.mxu1 }
 0x2de   : > { %v1151_v54 = vadd.f32 %v2147_v19, %v1150_v63 }
 0x2df   : > { %v1194_v40 = vmax.f32 %v1178_v36, 0.0 }
 0x2e2   : > { %v1071_v20 = vpop.f32.mrf.mxu0 }
 0x2e3   : > { %v1072_v39 = vadd.f32 %v2142_v16, %v1071_v20 }
 0x2e5   : > { %v1179_v38 = vadd.f32 %v1141_v48, %v1072_v39  ;;  %v1153_v13 = vpop.f32.mrf.mxu1 }
 0x2e6   : > { %v1154_v25 = vadd.f32 %v2147_v19, %v1153_v13 }
 0x2e7   : > { %v1195_v49 = vmax.f32 %v1179_v38, 0.0 }
 0x2e9   : > { %v1210_v51 = vpack.c.bf16 %v1195_v49, %v1194_v40 }
 0x2ea   : > { %v1074_v56 = vpop.f32.mrf.mxu0 }
 0x2eb   : > { %1544 = vmatmul.msk.bf16.vlgmr.msrb.gmra.mxu2 %vm1035_vm2, %v1210_v51  ;;  %v1075_v58 = vadd.f32 %v2142_v16, %v1074_v56 }
 0x2ed   : > { %v1180_v45 = vadd.f32 %v1144_v62, %v1075_v58  ;;  %v1155_v60 = vpop.f32.mrf.mxu1 }
 0x2ee   : > { %v1156_v27 = vadd.f32 %v2147_v19, %v1155_v60 }
 0x2ef   : > { %v1196_v5 = vmax.f32 %v1180_v45, 0.0 }
 0x2f2   : > { %v1076_v43 = vpop.f32.mrf.mxu0 }
 0x2f3   : > { %v1077_v47 = vadd.f32 %v2142_v16, %v1076_v43 }
 0x2f5   : > { %v1181_v1 = vadd.f32 %v1146_v46, %v1077_v47  ;;  %v1158_v23 = vpop.f32.mrf.mxu1 }
 0x2f6   : > { %v1159_v29 = vadd.f32 %v2147_v19, %v1158_v23 }
 0x2f7   : > { %v1197_v6 = vmax.f32 %v1181_v1, 0.0 }
 0x2f9   : > { %v1211_v8 = vpack.c.bf16 %v1197_v6, %v1196_v5 }
 0x2fa   : > { %v1079_v9 = vpop.f32.mrf.mxu0 }
 0x2fb   : > { %1545 = vmatmul.msk.bf16.gmra.mxu2 %vm1035_vm2, %v1211_v8  ;;  %v1080_v50 = vadd.f32 %v2142_v16, %v1079_v9 }
 0x2fd   : > { %v1182_v14 = vadd.f32 %v1149_v53, %v1080_v50  ;;  %v1160_v35 = vpop.f32.mrf.mxu1 }
 0x2fe   : > { %v1161_v31 = vadd.f32 %v2147_v19, %v1160_v35 }
 0x2ff   : > { %v1198_v22 = vmax.f32 %v1182_v14, 0.0 }
 0x302   : > { %v1081_v52 = vpop.f32.mrf.mxu0 }
 0x303   : > { %v1082_v15 = vadd.f32 %v2142_v16, %v1081_v52 }
 0x305   : > { %v1183_v18 = vadd.f32 %v1151_v54, %v1082_v15  ;;  %v1163_v12 = vpop.f32.mrf.mxu1 }
 0x306   : > { %v1164_v20 = vadd.f32 %v2147_v19, %v1163_v12 }
 0x307   : > { %v1199_v57 = vmax.f32 %v1183_v18, 0.0 }
 0x309   : > { %v1212_v59 = vpack.c.bf16 %v1199_v57, %v1198_v22 }
 0x30a   : > { %v1084_v61 = vpop.f32.mrf.mxu0 }
 0x30b   : > { %1546 = vmatmul.msk.bf16.gmra.mxu2 %vm1035_vm2, %v1212_v59  ;;  %v1085_v24 = vadd.f32 %v2142_v16, %v1084_v61 }
 0x30d   : > { %v1184_v28 = vadd.f32 %v1154_v25, %v1085_v24  ;;  %v1165_v17 = vpop.f32.mrf.mxu1  ;;  %v1627_v24 = vld [vmem:[%s2261_s14] ss:$0 sm:$0xff] }
 0x30e   : > { %v1166_v36 = vadd.f32 %v2147_v19, %v1165_v17 }
 0x30f   : > { %v1200_v2 = vmax.f32 %v1184_v28, 0.0 }
 0x312   : > { %v1086_v26 = vpop.f32.mrf.mxu0 }
 0x313   : > { %v1087_v0 = vadd.f32 %v2142_v16, %v1086_v26 }
 0x315   : > { %v1185_v3 = vadd.f32 %v1156_v27, %v1087_v0  ;;  %v1168_v55 = vpop.f32.mrf.mxu1 }
 0x316   : > { %v1169_v46 = vadd.f32 %v2147_v19, %v1168_v55 }
 0x317   : > { %v1201_v4 = vmax.f32 %v1185_v3, 0.0 }
 0x319   : > { %v1213_v30 = vpack.c.bf16 %v1201_v4, %v1200_v2 }
 0x31a   : > { %v1089_v34 = vpop.f32.mrf.mxu0 }
 0x31b   : > { %1547 = vmatmul.msk.bf16.gmra.mxu2 %vm1035_vm2, %v1213_v30  ;;  %v1090_v37 = vadd.f32 %v2142_v16, %v1089_v34 }
 0x31d   : > { %v1186_v7 = vadd.f32 %v1159_v29, %v1090_v37  ;;  %v1170_v62 = vpop.f32.mrf.mxu1 }
 0x31e   : > { %v1171_v47 = vadd.f32 %v2147_v19, %v1170_v62 }
 0x31f   : > { %v1202_v33 = vmax.f32 %v1186_v7, 0.0 }
 0x322   : > { %v1091_v32 = vpop.f32.mrf.mxu0 }
 0x323   : > { %v1092_v11 = vadd.f32 %v2142_v16, %v1091_v32 }
 0x325   : > { %v1187_v10 = vadd.f32 %v1161_v31, %v1092_v11  ;;  %v1173_v6 = vpop.f32.mrf.mxu1 }
 0x326   : > { %v1174_v54 = vadd.f32 %v2147_v19, %v1173_v6 }
 0x327   : > { %v1203_v41 = vmax.f32 %v1187_v10, 0.0 }
 0x329   : > { %v1214_v42 = vpack.c.bf16 %v1203_v41, %v1202_v33 }
 0x32a   : > { %v1094_v21 = vpop.f32.mrf.mxu0 }
 0x32b   : > { %1548 = vmatmul.msk.bf16.gmra.mxu2 %vm1035_vm2, %v1214_v42  ;;  %v1095_v44 = vadd.f32 %v2142_v16, %v1094_v21 }
 0x32d   : > { %v1188_v39 = vadd.f32 %v1164_v20, %v1095_v44  ;;  %v1175_v52 = vpop.f32.mrf.mxu1 }
 0x32e   : > { %v1176_v15 = vadd.f32 %v2147_v19, %v1175_v52 }
 0x32f   : > { %v1204_v49 = vmax.f32 %v1188_v39, 0.0 }
 0x332   : > { %v1096_v48 = vpop.f32.mrf.mxu0 }
 0x333   : > { %v1097_v38 = vadd.f32 %v2142_v16, %v1096_v48 }
 0x335   : > { %v1189_v40 = vadd.f32 %v1166_v36, %v1097_v38 }
 0x337   : > { %v1205_v51 = vmax.f32 %v1189_v40, 0.0 }
 0x339   : > { %v1215_v56 = vpack.c.bf16 %v1205_v51, %v1204_v49 }
 0x33b   : > { %1549 = vmatmul.msk.bf16.gmra.mxu2 %vm1035_vm2, %v1215_v56 }
 0x340   : > { %v1099_v58 = vpop.f32.mrf.mxu0 }
 0x341   : > { %v1100_v43 = vadd.f32 %v2142_v16, %v1099_v58 }
 0x343   : > { %v1190_v63 = vadd.f32 %v1169_v46, %v1100_v43 }
 0x345   : > { %v1206_v8 = vmax.f32 %v1190_v63, 0.0 }
 0x348   : > { %v1101_v45 = vpop.f32.mrf.mxu0 }
 0x349   : > { %v1102_v1 = vadd.f32 %v2142_v16, %v1101_v45 }
 0x34b   : > { %v1191_v5 = vadd.f32 %v1171_v47, %v1102_v1 }
 0x34d   : > { %v1207_v9 = vmax.f32 %v1191_v5, 0.0 }
 0x34f   : > { %v1216_v13 = vpack.c.bf16 %v1207_v9, %v1206_v8 }
 0x350   : > { %v1104_v50 = vpop.f32.mrf.mxu0 }
 0x351   : > { %1550 = vmatmul.msk.bf16.gmra.mxu2 %vm1035_vm2, %v1216_v13  ;;  %v1105_v53 = vadd.f32 %v2142_v16, %v1104_v50 }
 0x353   : > { %v1192_v18 = vadd.f32 %v1174_v54, %v1105_v53 }
 0x355   : > { %v1208_v60 = vmax.f32 %v1192_v18, 0.0 }
 0x358   : > { %v1106_v14 = vpop.f32.mrf.mxu0 }
 0x359   : > { %v1107_v22 = vadd.f32 %v2142_v16, %v1106_v14 }
 0x35b   : > { %v1193_v57 = vadd.f32 %v1176_v15, %v1107_v22 }
 0x35d   : > { %v1209_v59 = vmax.f32 %v1193_v57, 0.0 }
 0x35f   : > { %v1217_v61 = vpack.c.bf16 %v1209_v59, %v1208_v60 }
 0x361   : > { %1551 = vmatmul.msk.bf16.gmra.mxu2 %vm1035_vm2, %v1217_v61 }
 0x36e   : > { %v1287_v25 = vpop.f32.mrf.mxu2 }
 0x36f   : > { %v1288_v23 = vadd.f32 %v1627_v24, %v1287_v25 }
 0x371   : > { %1327 = vst [vmem:[%s2195_s27] sm:$0xff] %v1288_v23 }
 0x376   : > { %v1289_v16 = vpop.f32.mrf.mxu2 }
 0x377   : > { %v1290_v19 = vadd.f32 %v1627_v24, %v1289_v16 }
 0x379   : > { %1328 = vst [vmem:[%s2195_s27 + $0x8] sm:$0xff] %v1290_v19 }
 0x37e   : > { %v1292_v26 = vpop.f32.mrf.mxu2 }
 0x37f   : > { %v1293_v27 = vadd.f32 %v1627_v24, %v1292_v26 }
 0x381   : > { %1329 = vst [vmem:[%s2195_s27 + $0x10] sm:$0xff] %v1293_v27 }
 0x386   : > { %v1294_v28 = vpop.f32.mrf.mxu2 }
 0x387   : > { %v1295_v0 = vadd.f32 %v1627_v24, %v1294_v28 }
 0x389   : > { %1330 = vst [vmem:[%s2195_s27 + $0x18] sm:$0xff] %v1295_v0 }
 0x38e   : > { %v1297_v3 = vpop.f32.mrf.mxu2 }
 0x38f   : > { %v1298_v2 = vadd.f32 %v1627_v24, %v1297_v3 }
 0x391   : > { %1331 = vst [vmem:[%s2195_s27 + $0x20] sm:$0xff] %v1298_v2 }
 0x396   : > { %v1299_v4 = vpop.f32.mrf.mxu2 }
 0x397   : > { %v1300_v30 = vadd.f32 %v1627_v24, %v1299_v4 }
 0x399   : > { %1332 = vst [vmem:[%s2195_s27 + $0x28] sm:$0xff] %v1300_v30 }
 0x39e   : > { %v1302_v34 = vpop.f32.mrf.mxu2 }
 0x39f   : > { %v1303_v35 = vadd.f32 %v1627_v24, %v1302_v34 }
 0x3a1   : > { %1333 = vst [vmem:[%s2195_s27 + $0x30] sm:$0xff] %v1303_v35 }
 0x3a6   : > { %v1304_v37 = vpop.f32.mrf.mxu2 }
 0x3a7   : > { %v1305_v29 = vadd.f32 %v1627_v24, %v1304_v37 }
 0x3a9   : > { %1334 = vst [vmem:[%s2195_s27 + $0x38] sm:$0xff] %v1305_v29 }
 0x3ae   : > { %v1307_v32 = vpop.f32.mrf.mxu2 }
 0x3af   : > { %v1308_v31 = vadd.f32 %v1627_v24, %v1307_v32 }
 0x3b1   : > { %1335 = vst [vmem:[%s2195_s27 + $0x40] sm:$0xff] %v1308_v31 }
 0x3b6   : > { %v1309_v7 = vpop.f32.mrf.mxu2 }
 0x3b7   : > { %v1310_v11 = vadd.f32 %v1627_v24, %v1309_v7 }
 0x3b9   : > { %1336 = vst [vmem:[%s2195_s27 + $0x48] sm:$0xff] %v1310_v11 }
 0x3be   : > { %v1312_v10 = vpop.f32.mrf.mxu2 }
 0x3bf   : > { %v1313_v12 = vadd.f32 %v1627_v24, %v1312_v10 }
 0x3c1   : > { %1337 = vst [vmem:[%s2195_s27 + $0x50] sm:$0xff] %v1313_v12 }
 0x3c6   : > { %v1314_v33 = vpop.f32.mrf.mxu2 }
 0x3c7   : > { %v1315_v41 = vadd.f32 %v1627_v24, %v1314_v33 }
 0x3c9   : > { %1338 = vst [vmem:[%s2195_s27 + $0x58] sm:$0xff] %v1315_v41 }
 0x3d4   : > { %v1317_v42 = vpop.f32.mrf.mxu2 }
 0x3d5   : > { %v1318_v21 = vadd.f32 %v1627_v24, %v1317_v42 }
 0x3d7   : > { %1339 = vst [vmem:[%s2195_s27 + $0x60] sm:$0xff] %v1318_v21 }
 0x3dc   : > { %v1319_v44 = vpop.f32.mrf.mxu2 }
 0x3dd   : > { %v1320_v17 = vadd.f32 %v1627_v24, %v1319_v44 }
 0x3df   : > { %1340 = vst [vmem:[%s2195_s27 + $0x68] sm:$0xff] %v1320_v17 }
 0x3e4   : > { %v1322_v20 = vpop.f32.mrf.mxu2 }
 0x3e5   : > { %v1323_v48 = vadd.f32 %v1627_v24, %v1322_v20 }
 0x3e7   : > { %1341 = vst [vmem:[%s2195_s27 + $0x70] sm:$0xff] %v1323_v48 }
 0x3ec   : > { %v1324_v36 = vpop.f32.mrf.mxu2 }
 0x3ed   : > { %v1325_v39 = vadd.f32 %v1627_v24, %v1324_v36 }
 0x3ef   : > { %1342 = vst [vmem:[%s2195_s27 + $0x78] sm:$0xff] %v1325_v39 }
 0x3f0   : > { %1655 = shalt.err (!%p1652_p3)
}
 0x3f1   : > { %s1692_s0 = smov 128   ;;  %s1693_s27 = smov 8  }
 0x3f2   : > { %1580 = dma.vmem_to_hbm [thread:$0]  (%p1812_p5), %s1357_s26, 2048, %s1359_s17, %s1344_s1, %s1692_s0, %s1692_s0, %s1693_s27  }
 0x3f3 PF: > { %p1586_p4 = scmp.ge.s32.totalorder %s1690_s21, 2  ;;  %s1373_s3 = sand.u32 1, %s1678_s18  }
 0x3f4   : > { %s1374_s16 = scalar_lea.sflag [#allocation3], %s1373_s3 }
 0x3f5   : > { %p1583_p7 = pnand %p1586_p4, %p1816_p6 }
 0x3f7   : > { %p1584_p8 = pneg %p1583_p7 }
 0x3f9   : > { %1673 = dma.done.wait (%p1584_p8), %s1374_s16, 2048  }
 0x3fa   : > { %1675 = vsyncadd (%p1584_p8), %s1374_s16, 4294965248  ;;  %s2276_s2 = sld [smem:[#allocation5_spill]]  ;;  %p25_p9 = scmp.ge.s32.totalorder %s1799_s24, 4  }
 0x3fb   : > { %s2277_s18 = smov %s1682_s19  ;;  %s2278_s19 = smov %s1686_s20 }
 0x3fc   : > { %s2280_s21 = smov %s1799_s24  ;;  %27 = sbr.rel (!%p25_p9) target bundleno = 8 (0x8), region = 115 }
 0x400   : > { %s2279_s20 = smov %s2276_s2 }
 0x401   :  { %1380 = vsyncpa [#allocation3], 1 }
 0x402   :  { %1382 = vsyncpa [#allocation3 + $0x1], 1 }

// kernel: tpu_custom_call.1
= control target key start
LH: loop header
LB: loop body
LE: loop exit
PB: predicated region body
PF: predicated region fallthrough
CT: control target
= control target key end

     0   :  { %s2247_s0 = inlined_call_operand.vmem [shape: f32[256,16], index: 0, kind: input, shape index: {}]   ;;  %s2248_s1 = inlined_call_operand.vmem [shape: bf16[16,32], index: 1, kind: input, shape index: {}]   ;;  %s2249_s2 = inlined_call_operand.vmem [shape: f32[1,32], index: 2, kind: input, shape index: {}]   ;;  %s2250_s3 = inlined_call_operand.vmem [shape: bf16[32,32], index: 3, kind: input, shape index: {}]   ;;  %s2251_s4 = inlined_call_operand.vmem [shape: f32[1,32], index: 4, kind: input, shape index: {}]   ;;  %s2252_s5 = inlined_call_operand.vmem [shape: bf16[32,32], index: 5, kind: input, shape index: {}]   ;;  %s2253_s6 = inlined_call_operand.vmem [shape: f32[1,32], index: 6, kind: input, shape index: {}]   ;;  %s2254_s7 = inlined_call_operand.vmem [shape: bf16[32,64], index: 7, kind: input, shape index: {}]   ;;  %s2255_s8 = inlined_call_operand.vmem [shape: f32[1,64], index: 8, kind: input, shape index: {}]   ;;  %s2256_s9 = inlined_call_operand.vmem [shape: bf16[64,64], index: 9, kind: input, shape index: {}]   ;;  %s2257_s10 = inlined_call_operand.vmem [shape: f32[1,64], index: 10, kind: input, shape index: {}]   ;;  %s2258_s11 = inlined_call_operand.vmem [shape: bf16[32,64], index: 11, kind: input, shape index: {}]   ;;  %s2259_s12 = inlined_call_operand.vmem [shape: f32[1,64], index: 12, kind: input, shape index: {}]   ;;  %s2260_s13 = inlined_call_operand.vmem [shape: bf16[64,128], index: 13, kind: input, shape index: {}]   ;;  %s2261_s14 = inlined_call_operand.vmem [shape: f32[1,128], index: 14, kind: input, shape index: {}]   ;;  %s2262_s15 = inlined_call_operand.hbm [shape: f32[256,128], index: 15, kind: output, shape index: {}]  }
   0x1   :  { %2264 = sst [smem:[#allocation6_spill]] %s2247_s0 }
   0x2   :  { %2265 = sst [smem:[#allocation7_spill]] %s2248_s1 }
   0x3   :  { %2266 = sst [smem:[#allocation8_spill]] %s2249_s2 }
   0x4   :  { %2267 = sst [smem:[#allocation9_spill]] %s2250_s3 }
   0x5   :  { %20 = vsyncpa [#allocation3], 0 }
   0x6   :  { %22 = vsyncpa [#allocation3 + $0x1], 0  ;;  %s1774_s18 = smov 0   ;;  %s1776_s19 = smov 0  }
   0x7   :  { %s1778_s20 = smov 0   ;;  %s1780_s21 = smov 0  }
   0x8 LB: > { %s1795_s22 = sadd.s32 4294967295, %s1690_s21   ;;  %s1421_s23 = sadd.s32 4294967294, %s1690_s21   ;;  %s1690_s21 = sphi %s1780_s21, %s2280_s21   ;;  %s1686_s20 = sphi %s1778_s20, %s2279_s20   ;;  %s1682_s19 = sphi %s1776_s19, %s2278_s19   ;;  %s1678_s18 = sphi %s1774_s18, %s2277_s18  }
   0x9   : > { %s1799_s24 = sadd.s32 1, %s1690_s21   ;;  %s355_s25 = sadd.s32 1, %s1686_s20 }
   0xa   : > { %s352_s26 = ssub.s32 %s1690_s21, %s1799_s24  ;;  %p365_p0 = scmp.ne.s32.totalorder %s1686_s20, %s1682_s19 }
   0xb   : > { %p353_p1 = scmp.eq.s32.totalorder %s352_s26, 0  ;;  %p366_p2 = scmp.eq.s32.totalorder %s1795_s22, 1 }
   0xc   : > { %p371_p3 = scmp.ne.s32.totalorder %s1682_s19, %s1678_s18  ;;  %p372_p4 = scmp.eq.s32.totalorder %s1421_s23, 1 }
   0xd   : > { %s1810_s27 = scalar_select %p353_p1, %s1686_s20, %s355_s25  }
   0xe   : > { %p1812_p5 = por %p366_p2, %p365_p0  ;;  %p1816_p6 = por %p372_p4, %p371_p3 }
   0xf   : > { %2268 = sst [smem:[#allocation5_spill]] %s1810_s27  ;;  %p1424_p7 = scmp.ge.s32.totalorder %s1690_s21, 1 }
  0x10   : > { %p441_p8 = scmp.lt.s32.totalorder %s1690_s21, 3 }
  0x12   : > { %p442_p9 = pnand %p1424_p7, %p441_p8 }
  0x13   : > { %s2271_s1 = sld [smem:[#allocation7_spill]] (!%p442_p9)  ;;  %s1426_s17 = sshll.u32 (!%p442_p9), %s1795_s22, 4 }
  0x14   : > { %445 = sbr.rel (%p442_p9) target bundleno = 1011 (0x3f3), region = 80  ;;  %p490_p10 = scmp.lt.s32.totalorder (!%p442_p9), %s1426_s17, 31 }
  0x15   : > { %s2272_s0 = sld [smem:[#allocation6_spill]] (!%p442_p9)  ;;  %s1574_s30 = sshll.u32 (!%p442_p9), %s1795_s22, 7 }
  0x16   : > { %s2273_s3 = sld [smem:[#allocation9_spill]] (!%p442_p9)  ;;  %s1355_s25 = scalar_lea.hbm (!%p442_p9), %s2262_s15, %s1574_s30 }
  0x17   : > { %s2274_s2 = sld [smem:[#allocation8_spill]] (!%p442_p9)  ;;  %s1648_s30 = scalar_lea.hbm (!%p442_p9), %s2262_s15, 256 }
  0x19   : > { %v1557_v0 = vld [vmem:[%s2271_s1] sm:$0xff]  ;;  %s2282_s17 = smov (!%p490_p10, %s1426_s17), 31  ;;  %vm533_vm0 = vcmask 130048   ;;  %vm651_vm1 = vcmask 261120   ;;  %vm1035_vm2 = vcmask 523264  }
  0x1a   : > { %565 = vmatpush.bf16.msra.mxu0 %v1557_v0  ;;  %1575 = vmatpush.bf16.msra.mxu3 %v1557_v0  ;;  %s1427_s23 = sshll.u32 %s2282_s17, 3  ;;  %s2263_s17 = sand.u32 1, %s1682_s19  }
  0x1b   : > { %s1829_s27 = scalar_lea.vmem %s2272_s0, %s1427_s23  ;;  %s1425_s23 = sshll.u32 %s2263_s17, 7 }
  0x1c   : > { %v497_v1 = vld [vmem:[%s1829_s27] sm:$0xff]  ;;  %v498_v2 = vld [vmem:[%s1829_s27 + $0x8] sm:$0xff]  ;;  %v499_v4 = vld [vmem:[%s1829_s27 + $0x10] sm:$0xff]  ;;  %s1358_s17 = sshll.u32 %s1355_s25, 4  ;;  %s2275_s0 = sand.u32 1, %s1682_s19   ;;  %s1359_s17 = int_to_ptr.hbm [resolvable:$true] %s1358_s17 }
  0x1d   : > { %v513_v3 = vpack.c.bf16 %v498_v2, %v497_v1  ;;  %v500_v5 = vld [vmem:[%s1829_s27 + $0x18] sm:$0xff]  ;;  %v501_v7 = vld [vmem:[%s1829_s27 + $0x20] sm:$0xff]  ;;  %v502_v8 = vld [vmem:[%s1829_s27 + $0x28] sm:$0xff]  ;;  %s1344_s1 = scalar_lea.sflag [#allocation3], %s2275_s0 }
  0x1e   : > { %v514_v6 = vpack.c.bf16 %v500_v5, %v499_v4  ;;  %v515_v9 = vpack.c.bf16 %v502_v8, %v501_v7  ;;  %v503_v10 = vld [vmem:[%s1829_s27 + $0x30] sm:$0xff]  ;;  %v504_v11 = vld [vmem:[%s1829_s27 + $0x38] sm:$0xff]  ;;  %v505_v13 = vld [vmem:[%s1829_s27 + $0x40] sm:$0xff] }
  0x1f   : > { %1432 = vmatmul.msk.bf16.vlgmr.msra.gmra.mxu0 %vm533_vm0, %v513_v3  ;;  %v516_v12 = vpack.c.bf16 %v504_v11, %v503_v10  ;;  %v506_v14 = vld [vmem:[%s1829_s27 + $0x48] sm:$0xff]  ;;  %v511_v16 = vld [vmem:[%s1829_s27 + $0x70] sm:$0xff]  ;;  %v512_v17 = vld [vmem:[%s1829_s27 + $0x78] sm:$0xff] }
  0x20   : > { %v517_v15 = vpack.c.bf16 %v506_v14, %v505_v13  ;;  %v520_v18 = vpack.c.bf16 %v512_v17, %v511_v16  ;;  %v507_v19 = vld [vmem:[%s1829_s27 + $0x50] sm:$0xff]  ;;  %v508_v20 = vld [vmem:[%s1829_s27 + $0x58] sm:$0xff]  ;;  %v509_v22 = vld [vmem:[%s1829_s27 + $0x60] sm:$0xff] }
  0x21   : > { %v518_v21 = vpack.c.bf16 %v508_v20, %v507_v19  ;;  %v510_v23 = vld [vmem:[%s1829_s27 + $0x68] sm:$0xff]  ;;  %v1558_v26 = vld [vmem:[%s2273_s3] sm:$0xff]  ;;  %s2195_s27 = scalar_lea.vmem [#allocation2], %s1425_s23 }
  0x22   : > { %1439 = vmatmul.msk.bf16.vlgmr.msra.gmra.mxu3 %vm533_vm0, %v520_v18  ;;  %v519_v24 = vpack.c.bf16 %v510_v23, %v509_v22  ;;  %v1559_v25 = vld [vmem:[%s2273_s3 + $0x8] sm:$0xff]  ;;  %v1864_v28 = vld [vmem:[%s2274_s2] ss:$0 sm:$0xff]  ;;  %s1356_s26 = sshll.u32 %s2195_s27, 4  ;;  %s1642_s2 = sshra.s32 %s1359_s17, 4  ;;  %s1357_s26 = int_to_ptr.vmem [resolvable:$true] %s1356_s26  ;;  %s1643_s2 = int_to_ptr.hbm [resolvable:$true] %s1642_s2 }
  0x23   : > { %682 = vmatpush.bf16.msra.mxu1 %v1559_v25  ;;  %1576 = vmatpush.bf16.msrb.mxu3 %v1559_v25  ;;  %v1560_v18 = vld [vmem:[%s2252_s5] sm:$0xff]  ;;  %s1644_s22 = scalar_lea.hbm %s1643_s2, 128  ;;  %p1649_p0 = scmp.lt.s32.totalorder %s1643_s2, %s2262_s15 }
  0x24   : > { %v1979_v23 = vld [vmem:[%s2251_s4] ss:$0 sm:$0xff]  ;;  %p1645_p11 = scmp.ne.s32.totalorder %s1643_s2, %s1644_s22  ;;  %p1650_p1 = scmp.lt.s32.totalorder %s1648_s30, %s1644_s22 }
  0x26   : > { %p1646_p12 = pnand %p1645_p11, %p1812_p5  ;;  %p1651_p2 = por %p1650_p1, %p1649_p0 }
  0x27   : > { %683 = vmatpush.bf16.msra.mxu1 %v1558_v26  ;;  %1577 = vmatpush.bf16.msrb.mxu3 %v1558_v26 }
  0x28   : > { %p1647_p13 = pneg %p1646_p12 }
  0x2a   : > { %p1652_p3 = pnand %p1651_p2, %p1647_p13 }
  0x2f   : > { %1433 = vmatmul.msk.bf16.gmra.mxu0 %vm533_vm0, %v514_v6 }
  0x3f   : > { %1434 = vmatmul.msk.bf16.gmra.mxu0 %vm533_vm0, %v515_v9 }
  0x4f   : > { %1435 = vmatmul.msk.bf16.gmra.mxu0 %vm533_vm0, %v516_v12 }
  0x5f   : > { %1436 = vmatmul.msk.bf16.gmra.mxu0 %vm533_vm0, %v517_v15  ;;  %v1561_v15 = vld [vmem:[%s2252_s5 + $0x8] sm:$0xff] }
  0x60   : > { %799 = vmatpush.bf16.msra.mxu2 %v1561_v15  ;;  %1578 = vmatpush.bf16.msra.mxu3 %v1561_v15 }
  0x64   : > { %800 = vmatpush.bf16.msra.mxu2 %v1560_v18  ;;  %1579 = vmatpush.bf16.msra.mxu3 %v1560_v18 }
  0x6f   : > { %1437 = vmatmul.msk.bf16.gmra.mxu0 %vm533_vm0, %v518_v21 }
  0x7f   : > { %1438 = vmatmul.msk.bf16.gmra.mxu0 %vm533_vm0, %v519_v24 }
  0x9c   : > { %v567_v27 = vpop.f32.mrf.mxu0 }
  0x9d   : > { %v1867_v29 = vadd.f32 %v1864_v28, %v567_v27 }
  0x9f   : > { %v607_v32 = vmax.f32 %v1867_v29, 0.0 }
  0xa4   : > { %v569_v30 = vpop.f32.mrf.mxu0 }
  0xa5   : > { %v1870_v31 = vadd.f32 %v1864_v28, %v569_v30  ;;  %v602_v9 = vpop.f32.mrf.mxu3 }
  0xa6   : > { %v1961_v16 = vadd.f32 %v1864_v28, %v602_v9 }
  0xa7   : > { %v608_v33 = vmax.f32 %v1870_v31, 0.0 }
  0xa8   : > { %v621_v19 = vmax.f32 %v1961_v16, 0.0 }
  0xa9   : > { %v623_v34 = vpack.c.bf16 %v608_v33, %v607_v32 }
  0xab   : > { %1448 = vmatmul.msk.bf16.vlgmr.msra.gmra.mxu1 %vm651_vm1, %v623_v34 }
  0xac   : > { %v572_v35 = vpop.f32.mrf.mxu0 }
  0xad   : > { %v1880_v36 = vadd.f32 %v1864_v28, %v572_v35  ;;  %v604_v14 = vpop.f32.mrf.mxu3 }
  0xae   : > { %v1964_v17 = vadd.f32 %v1864_v28, %v604_v14 }
  0xaf   : > { %v609_v39 = vmax.f32 %v1880_v36, 0.0 }
  0xb0   : > { %v622_v20 = vmax.f32 %v1964_v17, 0.0 }
  0xb2   : > { %v630_v21 = vpack.c.bf16 %v622_v20, %v621_v19 }
  0xb4   : > { %v574_v37 = vpop.f32.mrf.mxu0 }
  0xb5   : > { %v1883_v38 = vadd.f32 %v1864_v28, %v574_v37 }
  0xb7   : > { %v610_v40 = vmax.f32 %v1883_v38, 0.0 }
  0xb9   : > { %v624_v41 = vpack.c.bf16 %v610_v40, %v609_v39 }
  0xbb   : > { %1449 = vmatmul.msk.bf16.gmra.mxu1 %vm651_vm1, %v624_v41 }
  0xbc   : > { %v577_v42 = vpop.f32.mrf.mxu0 }
  0xbd   : > { %v1893_v43 = vadd.f32 %v1864_v28, %v577_v42 }
  0xbf   : > { %v611_v46 = vmax.f32 %v1893_v43, 0.0  ;;  %v1566_v43 = vld [vmem:[%s2256_s9 + $0x10] sm:$0xff] }
  0xc4   : > { %v579_v44 = vpop.f32.mrf.mxu0 }
  0xc5   : > { %v1896_v45 = vadd.f32 %v1864_v28, %v579_v44 }
  0xc7   : > { %v612_v47 = vmax.f32 %v1896_v45, 0.0 }
  0xc9   : > { %v625_v48 = vpack.c.bf16 %v612_v47, %v611_v46 }
  0xcb   : > { %1450 = vmatmul.msk.bf16.gmra.mxu1 %vm651_vm1, %v625_v48 }
  0xcc   : > { %v582_v49 = vpop.f32.mrf.mxu0 }
  0xcd   : > { %v1906_v50 = vadd.f32 %v1864_v28, %v582_v49 }
  0xcf   : > { %v613_v53 = vmax.f32 %v1906_v50, 0.0 }
  0xd4   : > { %v584_v51 = vpop.f32.mrf.mxu0 }
  0xd5   : > { %v1909_v52 = vadd.f32 %v1864_v28, %v584_v51 }
  0xd7   : > { %v614_v54 = vmax.f32 %v1909_v52, 0.0 }
  0xd9   : > { %v626_v55 = vpack.c.bf16 %v614_v54, %v613_v53 }
  0xdb   : > { %1451 = vmatmul.msk.bf16.gmra.mxu1 %vm651_vm1, %v626_v55 }
  0xdc   : > { %v587_v56 = vpop.f32.mrf.mxu0 }
  0xdd   : > { %v1919_v57 = vadd.f32 %v1864_v28, %v587_v56 }
  0xdf   : > { %v615_v60 = vmax.f32 %v1919_v57, 0.0 }
  0xe4   : > { %v589_v58 = vpop.f32.mrf.mxu0 }
  0xe5   : > { %v1922_v59 = vadd.f32 %v1864_v28, %v589_v58 }
  0xe7   : > { %v616_v61 = vmax.f32 %v1922_v59, 0.0 }
  0xe9   : > { %v627_v62 = vpack.c.bf16 %v616_v61, %v615_v60 }
  0xeb   : > { %1452 = vmatmul.msk.bf16.gmra.mxu1 %vm651_vm1, %v627_v62 }
  0xec   : > { %v592_v63 = vpop.f32.mrf.mxu0 }
  0xed   : > { %v1932_v0 = vadd.f32 %v1864_v28, %v592_v63 }
  0xef   : > { %v617_v3 = vmax.f32 %v1932_v0, 0.0 }
  0xf4   : > { %v594_v1 = vpop.f32.mrf.mxu0 }
  0xf5   : > { %v1935_v2 = vadd.f32 %v1864_v28, %v594_v1 }
  0xf7   : > { %v618_v4 = vmax.f32 %v1935_v2, 0.0 }
  0xf9   : > { %v628_v5 = vpack.c.bf16 %v618_v4, %v617_v3 }
  0xfb   : > { %1453 = vmatmul.msk.bf16.gmra.mxu1 %vm651_vm1, %v628_v5 }
  0xfc   : > { %v597_v6 = vpop.f32.mrf.mxu0 }
  0xfd   : > { %v1945_v7 = vadd.f32 %v1864_v28, %v597_v6 }
  0xff   : > { %v619_v11 = vmax.f32 %v1945_v7, 0.0 }
 0x104   : > { %v599_v8 = vpop.f32.mrf.mxu0 }
 0x105   : > { %v1948_v10 = vadd.f32 %v1864_v28, %v599_v8 }
 0x107   : > { %v620_v12 = vmax.f32 %v1948_v10, 0.0 }
 0x109   : > { %v629_v13 = vpack.c.bf16 %v620_v12, %v619_v11 }
 0x10b   : > { %1454 = vmatmul.msk.bf16.vlgmr.msrb.gmra.mxu3 %vm651_vm1, %v629_v13 }
 0x11b   : > { %1455 = vmatmul.msk.bf16.gmra.mxu3 %vm651_vm1, %v630_v21 }
 0x128   : > { %v685_v22 = vpop.f32.mrf.mxu1 }
 0x129   : > { %v686_v24 = vadd.f32 %v1979_v23, %v685_v22 }
 0x12b   : > { %v725_v27 = vmax.f32 %v686_v24, 0.0 }
 0x130   : > { %v687_v25 = vpop.f32.mrf.mxu1 }
 0x131   : > { %v688_v26 = vadd.f32 %v1979_v23, %v687_v25 }
 0x133   : > { %v726_v28 = vmax.f32 %v688_v26, 0.0 }
 0x135   : > { %v741_v30 = vpack.c.bf16 %v726_v28, %v725_v27 }
 0x137   : > { %1464 = vmatmul.msk.bf16.vlgmr.msra.gmra.mxu2 %vm651_vm1, %v741_v30 }
 0x138   : > { %v690_v34 = vpop.f32.mrf.mxu1 }
 0x139   : > { %v691_v35 = vadd.f32 %v1979_v23, %v690_v34 }
 0x13b   : > { %v727_v42 = vmax.f32 %v691_v35, 0.0 }
 0x140   : > { %v692_v37 = vpop.f32.mrf.mxu1 }
 0x141   : > { %v693_v41 = vadd.f32 %v1979_v23, %v692_v37 }
 0x143   : > { %v728_v44 = vmax.f32 %v693_v41, 0.0 }
 0x145   : > { %v742_v48 = vpack.c.bf16 %v728_v44, %v727_v42  ;;  %v1563_v42 = vld [vmem:[%s2254_s7 + $0x8] sm:$0xff] }
 0x146   : > { %932 = vmatpush.bf16.msrb.mxu3 %v1563_v42  ;;  %v1567_v42 = vld [vmem:[%s2256_s9 + $0x18] sm:$0xff] }
 0x147   : > { %1465 = vmatmul.msk.bf16.gmra.mxu2 %vm651_vm1, %v742_v48  ;;  %1064 = vmatpush.bf16.msrb.mxu0 %v1567_v42 }
 0x148   : > { %v695_v49 = vpop.f32.mrf.mxu1 }
 0x149   : > { %v696_v51 = vadd.f32 %v1979_v23, %v695_v49 }
 0x14b   : > { %v729_v58 = vmax.f32 %v696_v51, 0.0  ;;  %1065 = vmatpush.bf16.msrb.mxu0 %v1566_v43 }
 0x150   : > { %v697_v55 = vpop.f32.mrf.mxu1 }
 0x151   : > { %v698_v56 = vadd.f32 %v1979_v23, %v697_v55 }
 0x153   : > { %v730_v62 = vmax.f32 %v698_v56, 0.0 }
 0x155   : > { %v743_v63 = vpack.c.bf16 %v730_v62, %v729_v58 }
 0x157   : > { %1466 = vmatmul.msk.bf16.gmra.mxu2 %vm651_vm1, %v743_v63  ;;  %v1562_v63 = vld [vmem:[%s2254_s7] sm:$0xff] }
 0x158   : > { %v700_v1 = vpop.f32.mrf.mxu1  ;;  %933 = vmatpush.bf16.msrb.mxu3 %v1562_v63 }
 0x159   : > { %v701_v5 = vadd.f32 %v1979_v23, %v700_v1  ;;  %v1569_v1 = vld [vmem:[%s2258_s11 + $0x8] sm:$0xff] }
 0x15a   : > { %1135 = vmatpush.bf16.msrb.mxu1 %v1569_v1 }
 0x15b   : > { %v731_v9 = vmax.f32 %v701_v5, 0.0 }
 0x160   : > { %v702_v6 = vpop.f32.mrf.mxu1 }
 0x161   : > { %v703_v8 = vadd.f32 %v1979_v23, %v702_v6 }
 0x163   : > { %v732_v13 = vmax.f32 %v703_v8, 0.0  ;;  %v1568_v8 = vld [vmem:[%s2258_s11] sm:$0xff] }
 0x164   : > { %1136 = vmatpush.bf16.msrb.mxu1 %v1568_v8 }
 0x165   : > { %v744_v14 = vpack.c.bf16 %v732_v13, %v731_v9 }
 0x167   : > { %1467 = vmatmul.msk.bf16.gmra.mxu2 %vm651_vm1, %v744_v14 }
 0x168   : > { %v705_v15 = vpop.f32.mrf.mxu1 }
 0x169   : > { %v706_v18 = vadd.f32 %v1979_v23, %v705_v15 }
 0x16b   : > { %v733_v24 = vmax.f32 %v706_v18, 0.0 }
 0x170   : > { %v707_v21 = vpop.f32.mrf.mxu1 }
 0x171   : > { %v708_v22 = vadd.f32 %v1979_v23, %v707_v21  ;;  %v2020_v21 = vld [vmem:[%s2253_s6] ss:$0 sm:$0xff] }
 0x173   : > { %v734_v25 = vmax.f32 %v708_v22, 0.0 }
 0x175   : > { %v745_v26 = vpack.c.bf16 %v734_v25, %v733_v24 }
 0x177   : > { %1468 = vmatmul.msk.bf16.gmra.mxu2 %vm651_vm1, %v745_v26 }
 0x178   : > { %v710_v27 = vpop.f32.mrf.mxu1 }
 0x179   : > { %v711_v28 = vadd.f32 %v1979_v23, %v710_v27 }
 0x17b   : > { %v735_v35 = vmax.f32 %v711_v28, 0.0 }
 0x180   : > { %v712_v30 = vpop.f32.mrf.mxu1 }
 0x181   : > { %v713_v34 = vadd.f32 %v1979_v23, %v712_v30 }
 0x183   : > { %v736_v37 = vmax.f32 %v713_v34, 0.0 }
 0x185   : > { %v746_v41 = vpack.c.bf16 %v736_v37, %v735_v35 }
 0x187   : > { %1469 = vmatmul.msk.bf16.gmra.mxu2 %vm651_vm1, %v746_v41 }
 0x18e   : > { %v715_v44 = vpop.f32.mrf.mxu3 }
 0x18f   : > { %v716_v48 = vadd.f32 %v1979_v23, %v715_v44 }
 0x191   : > { %v737_v55 = vmax.f32 %v716_v48, 0.0 }
 0x196   : > { %v717_v49 = vpop.f32.mrf.mxu3 }
 0x197   : > { %v718_v51 = vadd.f32 %v1979_v23, %v717_v49 }
 0x199   : > { %v738_v56 = vmax.f32 %v718_v51, 0.0 }
 0x19b   : > { %v747_v58 = vpack.c.bf16 %v738_v56, %v737_v55 }
 0x19d   : > { %1470 = vmatmul.msk.bf16.vlgmr.msra.gmra.mxu3 %vm651_vm1, %v747_v58 }
 0x19e   : > { %v720_v62 = vpop.f32.mrf.mxu3 }
 0x19f   : > { %v721_v5 = vadd.f32 %v1979_v23, %v720_v62 }
 0x1a1   : > { %v739_v13 = vmax.f32 %v721_v5, 0.0 }
 0x1a6   : > { %v722_v6 = vpop.f32.mrf.mxu3 }
 0x1a7   : > { %v723_v9 = vadd.f32 %v1979_v23, %v722_v6 }
 0x1a9   : > { %v740_v14 = vmax.f32 %v723_v9, 0.0 }
 0x1ab   : > { %v748_v15 = vpack.c.bf16 %v740_v14, %v739_v13 }
 0x1ad   : > { %1471 = vmatmul.msk.bf16.gmra.mxu3 %vm651_vm1, %v748_v15 }
 0x1ba   : > { %v802_v18 = vpop.f32.mrf.mxu2 }
 0x1bb   : > { %v803_v22 = vadd.f32 %v2020_v21, %v802_v18 }
 0x1bd   : > { %v842_v25 = vadd.f32 %v803_v22, %v607_v32  ;;  %v1565_v22 = vld [vmem:[%s2256_s9 + $0x8] sm:$0xff] }
 0x1be   : > { %1066 = vmatpush.bf16.msrb.mxu0 %v1565_v22 }
 0x1bf   : > { %v858_v27 = vmax.f32 %v842_v25, 0.0 }
 0x1c2   : > { %v804_v24 = vpop.f32.mrf.mxu2 }
 0x1c3   : > { %v805_v23 = vadd.f32 %v2020_v21, %v804_v24 }
 0x1c5   : > { %v843_v26 = vadd.f32 %v805_v23, %v608_v33 }
 0x1c7   : > { %v859_v28 = vmax.f32 %v843_v26, 0.0 }
 0x1c9   : > { %v874_v30 = vpack.c.bf16 %v859_v28, %v858_v27  ;;  %v1564_v28 = vld [vmem:[%s2256_s9] sm:$0xff] }
 0x1ca   : > { %v807_v34 = vpop.f32.mrf.mxu2  ;;  %1067 = vmatpush.bf16.msrb.mxu0 %v1564_v28  ;;  %v1570_v28 = vld [vmem:[%s2260_s13] sm:$0xff] }
 0x1cb   : > { %1480 = vmatmul.msk.bf16.vlgmr.msrb.gmra.mxu3 %vm651_vm1, %v874_v30  ;;  %1520 = vmatmul.msk.bf16.vlgmr.msrb.gmra.mxu1 %vm651_vm1, %v874_v30  ;;  %v808_v35 = vadd.f32 %v2020_v21, %v807_v34 }
 0x1cd   : > { %v844_v29 = vadd.f32 %v808_v35, %v609_v39 }
 0x1cf   : > { %v860_v33 = vmax.f32 %v844_v29, 0.0 }
 0x1d2   : > { %v809_v37 = vpop.f32.mrf.mxu2 }
 0x1d3   : > { %v810_v32 = vadd.f32 %v2020_v21, %v809_v37 }
 0x1d5   : > { %v845_v31 = vadd.f32 %v810_v32, %v610_v40 }
 0x1d7   : > { %v861_v41 = vmax.f32 %v845_v31, 0.0 }
 0x1d9   : > { %v875_v44 = vpack.c.bf16 %v861_v41, %v860_v33 }
 0x1da   : > { %v812_v48 = vpop.f32.mrf.mxu2 }
 0x1db   : > { %1481 = vmatmul.msk.bf16.gmra.mxu3 %vm651_vm1, %v875_v44  ;;  %1521 = vmatmul.msk.bf16.gmra.mxu1 %vm651_vm1, %v875_v44  ;;  %v813_v36 = vadd.f32 %v2020_v21, %v812_v48  ;;  %v2101_v44 = vld [vmem:[%s2255_s8] ss:$0 sm:$0xff] }
 0x1dd   : > { %v846_v38 = vadd.f32 %v813_v36, %v611_v46 }
 0x1df   : > { %v862_v51 = vmax.f32 %v846_v38, 0.0 }
 0x1e2   : > { %v814_v39 = vpop.f32.mrf.mxu2 }
 0x1e3   : > { %v815_v40 = vadd.f32 %v2020_v21, %v814_v39 }
 0x1e5   : > { %v847_v49 = vadd.f32 %v815_v40, %v612_v47 }
 0x1e7   : > { %v863_v55 = vmax.f32 %v847_v49, 0.0 }
 0x1e9   : > { %v876_v56 = vpack.c.bf16 %v863_v55, %v862_v51 }
 0x1ea   : > { %v817_v58 = vpop.f32.mrf.mxu2 }
 0x1eb   : > { %1482 = vmatmul.msk.bf16.gmra.mxu3 %vm651_vm1, %v876_v56  ;;  %1522 = vmatmul.msk.bf16.gmra.mxu1 %vm651_vm1, %v876_v56  ;;  %v818_v62 = vadd.f32 %v2020_v21, %v817_v58  ;;  %v1573_v58 = vld [vmem:[%s2260_s13 + $0x18] sm:$0xff] }
 0x1ec   : > { %1282 = vmatpush.bf16.msrb.mxu2 %v1573_v58 }
 0x1ed   : > { %v848_v45 = vadd.f32 %v818_v62, %v613_v53 }
 0x1ef   : > { %v864_v1 = vmax.f32 %v848_v45, 0.0 }
 0x1f2   : > { %v819_v46 = vpop.f32.mrf.mxu2 }
 0x1f3   : > { %v820_v47 = vadd.f32 %v2020_v21, %v819_v46 }
 0x1f5   : > { %v849_v63 = vadd.f32 %v820_v47, %v614_v54 }
 0x1f7   : > { %v865_v5 = vmax.f32 %v849_v63, 0.0 }
 0x1f9   : > { %v877_v6 = vpack.c.bf16 %v865_v5, %v864_v1 }
 0x1fa   : > { %v822_v8 = vpop.f32.mrf.mxu2 }
 0x1fb   : > { %1483 = vmatmul.msk.bf16.gmra.mxu3 %vm651_vm1, %v877_v6  ;;  %1523 = vmatmul.msk.bf16.gmra.mxu1 %vm651_vm1, %v877_v6  ;;  %v823_v9 = vadd.f32 %v2020_v21, %v822_v8 }
 0x1fd   : > { %v850_v50 = vadd.f32 %v823_v9, %v615_v60 }
 0x1ff   : > { %v866_v54 = vmax.f32 %v850_v50, 0.0 }
 0x202   : > { %v824_v13 = vpop.f32.mrf.mxu2 }
 0x203   : > { %v825_v53 = vadd.f32 %v2020_v21, %v824_v13 }
 0x205   : > { %v851_v52 = vadd.f32 %v825_v53, %v616_v61  ;;  %v1572_v53 = vld [vmem:[%s2260_s13 + $0x10] sm:$0xff] }
 0x206   : > { %1283 = vmatpush.bf16.msrb.mxu2 %v1572_v53 }
 0x207   : > { %v867_v14 = vmax.f32 %v851_v52, 0.0 }
 0x209   : > { %v878_v15 = vpack.c.bf16 %v867_v14, %v866_v54 }
 0x20a   : > { %v827_v18 = vpop.f32.mrf.mxu2 }
 0x20b   : > { %1484 = vmatmul.msk.bf16.gmra.mxu3 %vm651_vm1, %v878_v15  ;;  %1524 = vmatmul.msk.bf16.gmra.mxu1 %vm651_vm1, %v878_v15  ;;  %v828_v57 = vadd.f32 %v2020_v21, %v827_v18 }
 0x20d   : > { %v852_v59 = vadd.f32 %v828_v57, %v617_v3 }
 0x20f   : > { %v868_v25 = vmax.f32 %v852_v59, 0.0  ;;  %v1571_v59 = vld [vmem:[%s2260_s13 + $0x8] sm:$0xff] }
 0x210   : > { %1284 = vmatpush.bf16.msrb.mxu2 %v1571_v59 }
 0x212   : > { %v829_v60 = vpop.f32.mrf.mxu2 }
 0x213   : > { %v830_v61 = vadd.f32 %v2020_v21, %v829_v60 }
 0x214   : > { %1285 = vmatpush.bf16.msrb.mxu2 %v1570_v28 }
 0x215   : > { %v853_v24 = vadd.f32 %v830_v61, %v618_v4 }
 0x217   : > { %v869_v23 = vmax.f32 %v853_v24, 0.0 }
 0x219   : > { %v879_v26 = vpack.c.bf16 %v869_v23, %v868_v25 }
 0x21b   : > { %1485 = vmatmul.msk.bf16.gmra.mxu3 %vm651_vm1, %v879_v26  ;;  %1525 = vmatmul.msk.bf16.gmra.mxu1 %vm651_vm1, %v879_v26 }
 0x220   : > { %v832_v27 = vpop.f32.mrf.mxu3 }
 0x221   : > { %v833_v0 = vadd.f32 %v2020_v21, %v832_v27 }
 0x223   : > { %v854_v2 = vadd.f32 %v833_v0, %v619_v11 }
 0x225   : > { %v870_v34 = vmax.f32 %v854_v2, 0.0 }
 0x228   : > { %v834_v3 = vpop.f32.mrf.mxu3 }
 0x229   : > { %v835_v4 = vadd.f32 %v2020_v21, %v834_v3 }
 0x22b   : > { %v855_v30 = vadd.f32 %v835_v4, %v620_v12 }
 0x22d   : > { %v871_v35 = vmax.f32 %v855_v30, 0.0 }
 0x22f   : > { %v880_v37 = vpack.c.bf16 %v871_v35, %v870_v34 }
 0x230   : > { %v837_v29 = vpop.f32.mrf.mxu3 }
 0x231   : > { %1486 = vmatmul.msk.bf16.gmra.mxu3 %vm651_vm1, %v880_v37  ;;  %1526 = vmatmul.msk.bf16.gmra.mxu1 %vm651_vm1, %v880_v37  ;;  %v838_v32 = vadd.f32 %v2020_v21, %v837_v29 }
 0x233   : > { %v856_v7 = vadd.f32 %v838_v32, %v621_v19 }
 0x235   : > { %v872_v12 = vmax.f32 %v856_v7, 0.0 }
 0x238   : > { %v839_v31 = vpop.f32.mrf.mxu3 }
 0x239   : > { %v840_v11 = vadd.f32 %v2020_v21, %v839_v31 }
 0x23b   : > { %v857_v10 = vadd.f32 %v840_v11, %v622_v20 }
 0x23d   : > { %v873_v33 = vmax.f32 %v857_v10, 0.0 }
 0x23f   : > { %v881_v41 = vpack.c.bf16 %v873_v33, %v872_v12 }
 0x241   : > { %1487 = vmatmul.msk.bf16.gmra.mxu3 %vm651_vm1, %v881_v41  ;;  %1527 = vmatmul.msk.bf16.gmra.mxu1 %vm651_vm1, %v881_v41 }
 0x248   : > { %v1138_v37 = vpop.f32.mrf.mxu1 }
 0x24e   : > { %v935_v42 = vpop.f32.mrf.mxu3 }
 0x24f   : > { %v936_v16 = vadd.f32 %v2101_v44, %v935_v42 }
 0x250   : > { %v1140_v31 = vpop.f32.mrf.mxu1 }
 0x251   : > { %v975_v17 = vmax.f32 %v936_v16, 0.0  ;;  %v2142_v16 = vld [vmem:[%s2257_s10] ss:$0 sm:$0xff] }
 0x256   : > { %v937_v19 = vpop.f32.mrf.mxu3 }
 0x257   : > { %v938_v21 = vadd.f32 %v2101_v44, %v937_v19  ;;  %v2147_v19 = vld [vmem:[%s2259_s12] ss:$0 sm:$0xff] }
 0x258   : > { %v1143_v41 = vpop.f32.mrf.mxu1 }
 0x259   : > { %v976_v20 = vmax.f32 %v938_v21, 0.0 }
 0x25b   : > { %v991_v48 = vpack.c.bf16 %v976_v20, %v975_v17  ;;  %v1139_v17 = vadd.f32 %v2147_v19, %v1138_v37 }
 0x25d   : > { %1504 = vmatmul.msk.bf16.vlgmr.msrb.gmra.mxu0 %vm1035_vm2, %v991_v48  ;;  %v1141_v48 = vadd.f32 %v2147_v19, %v1140_v31 }
 0x25e   : > { %v940_v36 = vpop.f32.mrf.mxu3 }
 0x25f   : > { %v941_v39 = vadd.f32 %v2101_v44, %v940_v36 }
 0x261   : > { %v977_v49 = vmax.f32 %v941_v39, 0.0 }
 0x266   : > { %v942_v38 = vpop.f32.mrf.mxu3 }
 0x267   : > { %v943_v40 = vadd.f32 %v2101_v44, %v942_v38 }
 0x269   : > { %v978_v51 = vmax.f32 %v943_v40, 0.0 }
 0x26b   : > { %v992_v55 = vpack.c.bf16 %v978_v51, %v977_v49 }
 0x26d   : > { %1505 = vmatmul.msk.bf16.gmra.mxu0 %vm1035_vm2, %v992_v55 }
 0x26e   : > { %v945_v56 = vpop.f32.mrf.mxu3 }
 0x26f   : > { %v946_v62 = vadd.f32 %v2101_v44, %v945_v56 }
 0x271   : > { %v979_v45 = vmax.f32 %v946_v62, 0.0  ;;  %v1144_v62 = vadd.f32 %v2147_v19, %v1143_v41 }
 0x276   : > { %v947_v43 = vpop.f32.mrf.mxu3 }
 0x277   : > { %v948_v46 = vadd.f32 %v2101_v44, %v947_v43 }
 0x279   : > { %v980_v47 = vmax.f32 %v948_v46, 0.0 }
 0x27b   : > { %v993_v63 = vpack.c.bf16 %v980_v47, %v979_v45 }
 0x27d   : > { %1506 = vmatmul.msk.bf16.gmra.mxu0 %vm1035_vm2, %v993_v63 }
 0x27e   : > { %v950_v1 = vpop.f32.mrf.mxu3 }
 0x27f   : > { %v951_v5 = vadd.f32 %v2101_v44, %v950_v1 }
 0x281   : > { %v981_v9 = vmax.f32 %v951_v5, 0.0 }
 0x286   : > { %v952_v6 = vpop.f32.mrf.mxu3 }
 0x287   : > { %v953_v8 = vadd.f32 %v2101_v44, %v952_v6 }
 0x289   : > { %v982_v13 = vmax.f32 %v953_v8, 0.0 }
 0x28b   : > { %v994_v50 = vpack.c.bf16 %v982_v13, %v981_v9 }
 0x28d   : > { %1507 = vmatmul.msk.bf16.gmra.mxu0 %vm1035_vm2, %v994_v50 }
 0x28e   : > { %v955_v52 = vpop.f32.mrf.mxu3 }
 0x28f   : > { %v956_v54 = vadd.f32 %v2101_v44, %v955_v52 }
 0x291   : > { %v983_v18 = vmax.f32 %v956_v54, 0.0 }
 0x296   : > { %v957_v14 = vpop.f32.mrf.mxu3 }
 0x297   : > { %v958_v15 = vadd.f32 %v2101_v44, %v957_v14 }
 0x299   : > { %v984_v22 = vmax.f32 %v958_v15, 0.0 }
 0x29b   : > { %v995_v57 = vpack.c.bf16 %v984_v22, %v983_v18 }
 0x29d   : > { %1508 = vmatmul.msk.bf16.gmra.mxu0 %vm1035_vm2, %v995_v57 }
 0x29e   : > { %v960_v60 = vpop.f32.mrf.mxu3 }
 0x29f   : > { %v961_v61 = vadd.f32 %v2101_v44, %v960_v60 }
 0x2a1   : > { %v985_v23 = vmax.f32 %v961_v61, 0.0 }
 0x2a6   : > { %v962_v24 = vpop.f32.mrf.mxu3 }
 0x2a7   : > { %v963_v25 = vadd.f32 %v2101_v44, %v962_v24 }
 0x2a9   : > { %v986_v26 = vmax.f32 %v963_v25, 0.0 }
 0x2ab   : > { %v996_v27 = vpack.c.bf16 %v986_v26, %v985_v23 }
 0x2ad   : > { %1509 = vmatmul.msk.bf16.gmra.mxu0 %vm1035_vm2, %v996_v27 }
 0x2b4   : > { %v965_v0 = vpop.f32.mrf.mxu3 }
 0x2b5   : > { %v966_v3 = vadd.f32 %v2101_v44, %v965_v0 }
 0x2b7   : > { %v987_v30 = vmax.f32 %v966_v3, 0.0 }
 0x2bc   : > { %v967_v2 = vpop.f32.mrf.mxu3 }
 0x2bd   : > { %v968_v4 = vadd.f32 %v2101_v44, %v967_v2 }
 0x2bf   : > { %v988_v34 = vmax.f32 %v968_v4, 0.0 }
 0x2c1   : > { %v997_v35 = vpack.c.bf16 %v988_v34, %v987_v30 }
 0x2c3   : > { %1510 = vmatmul.msk.bf16.gmra.mxu0 %vm1035_vm2, %v997_v35 }
 0x2c4   : > { %v970_v29 = vpop.f32.mrf.mxu3 }
 0x2c5   : > { %v971_v32 = vadd.f32 %v2101_v44, %v970_v29 }
 0x2c7   : > { %v989_v10 = vmax.f32 %v971_v32, 0.0 }
 0x2cc   : > { %v972_v7 = vpop.f32.mrf.mxu3 }
 0x2cd   : > { %v973_v11 = vadd.f32 %v2101_v44, %v972_v7  ;;  %v1145_v44 = vpop.f32.mrf.mxu1 }
 0x2ce   : > { %v1146_v46 = vadd.f32 %v2147_v19, %v1145_v44 }
 0x2cf   : > { %v990_v12 = vmax.f32 %v973_v11, 0.0 }
 0x2d1   : > { %v998_v33 = vpack.c.bf16 %v990_v12, %v989_v10 }
 0x2d3   : > { %1511 = vmatmul.msk.bf16.gmra.mxu0 %vm1035_vm2, %v998_v33 }
 0x2d5   : > { %v1148_v55 = vpop.f32.mrf.mxu1 }
 0x2d6   : > { %v1149_v53 = vadd.f32 %v2147_v19, %v1148_v55 }
 0x2da   : > { %v1069_v42 = vpop.f32.mrf.mxu0 }
 0x2db   : > { %v1070_v21 = vadd.f32 %v2142_v16, %v1069_v42 }
 0x2dd   : > { %v1178_v36 = vadd.f32 %v1139_v17, %v1070_v21  ;;  %v1150_v63 = vpop.f32.mrf.mxu1 }
 0x2de   : > { %v1151_v54 = vadd.f32 %v2147_v19, %v1150_v63 }
 0x2df   : > { %v1194_v40 = vmax.f32 %v1178_v36, 0.0 }
 0x2e2   : > { %v1071_v20 = vpop.f32.mrf.mxu0 }
 0x2e3   : > { %v1072_v39 = vadd.f32 %v2142_v16, %v1071_v20 }
 0x2e5   : > { %v1179_v38 = vadd.f32 %v1141_v48, %v1072_v39  ;;  %v1153_v13 = vpop.f32.mrf.mxu1 }
 0x2e6   : > { %v1154_v25 = vadd.f32 %v2147_v19, %v1153_v13 }
 0x2e7   : > { %v1195_v49 = vmax.f32 %v1179_v38, 0.0 }
 0x2e9   : > { %v1210_v51 = vpack.c.bf16 %v1195_v49, %v1194_v40 }
 0x2ea   : > { %v1074_v56 = vpop.f32.mrf.mxu0 }
 0x2eb   : > { %1544 = vmatmul.msk.bf16.vlgmr.msrb.gmra.mxu2 %vm1035_vm2, %v1210_v51  ;;  %v1075_v58 = vadd.f32 %v2142_v16, %v1074_v56 }
 0x2ed   : > { %v1180_v45 = vadd.f32 %v1144_v62, %v1075_v58  ;;  %v1155_v60 = vpop.f32.mrf.mxu1 }
 0x2ee   : > { %v1156_v27 = vadd.f32 %v2147_v19, %v1155_v60 }
 0x2ef   : > { %v1196_v5 = vmax.f32 %v1180_v45, 0.0 }
 0x2f2   : > { %v1076_v43 = vpop.f32.mrf.mxu0 }
 0x2f3   : > { %v1077_v47 = vadd.f32 %v2142_v16, %v1076_v43 }
 0x2f5   : > { %v1181_v1 = vadd.f32 %v1146_v46, %v1077_v47  ;;  %v1158_v23 = vpop.f32.mrf.mxu1 }
 0x2f6   : > { %v1159_v29 = vadd.f32 %v2147_v19, %v1158_v23 }
 0x2f7   : > { %v1197_v6 = vmax.f32 %v1181_v1, 0.0 }
 0x2f9   : > { %v1211_v8 = vpack.c.bf16 %v1197_v6, %v1196_v5 }
 0x2fa   : > { %v1079_v9 = vpop.f32.mrf.mxu0 }
 0x2fb   : > { %1545 = vmatmul.msk.bf16.gmra.mxu2 %vm1035_vm2, %v1211_v8  ;;  %v1080_v50 = vadd.f32 %v2142_v16, %v1079_v9 }
 0x2fd   : > { %v1182_v14 = vadd.f32 %v1149_v53, %v1080_v50  ;;  %v1160_v35 = vpop.f32.mrf.mxu1 }
 0x2fe   : > { %v1161_v31 = vadd.f32 %v2147_v19, %v1160_v35 }
 0x2ff   : > { %v1198_v22 = vmax.f32 %v1182_v14, 0.0 }
 0x302   : > { %v1081_v52 = vpop.f32.mrf.mxu0 }
 0x303   : > { %v1082_v15 = vadd.f32 %v2142_v16, %v1081_v52 }
 0x305   : > { %v1183_v18 = vadd.f32 %v1151_v54, %v1082_v15  ;;  %v1163_v12 = vpop.f32.mrf.mxu1 }
 0x306   : > { %v1164_v20 = vadd.f32 %v2147_v19, %v1163_v12 }
 0x307   : > { %v1199_v57 = vmax.f32 %v1183_v18, 0.0 }
 0x309   : > { %v1212_v59 = vpack.c.bf16 %v1199_v57, %v1198_v22 }
 0x30a   : > { %v1084_v61 = vpop.f32.mrf.mxu0 }
 0x30b   : > { %1546 = vmatmul.msk.bf16.gmra.mxu2 %vm1035_vm2, %v1212_v59  ;;  %v1085_v24 = vadd.f32 %v2142_v16, %v1084_v61 }
 0x30d   : > { %v1184_v28 = vadd.f32 %v1154_v25, %v1085_v24  ;;  %v1165_v17 = vpop.f32.mrf.mxu1  ;;  %v1627_v24 = vld [vmem:[%s2261_s14] ss:$0 sm:$0xff] }
 0x30e   : > { %v1166_v36 = vadd.f32 %v2147_v19, %v1165_v17 }
 0x30f   : > { %v1200_v2 = vmax.f32 %v1184_v28, 0.0 }
 0x312   : > { %v1086_v26 = vpop.f32.mrf.mxu0 }
 0x313   : > { %v1087_v0 = vadd.f32 %v2142_v16, %v1086_v26 }
 0x315   : > { %v1185_v3 = vadd.f32 %v1156_v27, %v1087_v0  ;;  %v1168_v55 = vpop.f32.mrf.mxu1 }
 0x316   : > { %v1169_v46 = vadd.f32 %v2147_v19, %v1168_v55 }
 0x317   : > { %v1201_v4 = vmax.f32 %v1185_v3, 0.0 }
 0x319   : > { %v1213_v30 = vpack.c.bf16 %v1201_v4, %v1200_v2 }
 0x31a   : > { %v1089_v34 = vpop.f32.mrf.mxu0 }
 0x31b   : > { %1547 = vmatmul.msk.bf16.gmra.mxu2 %vm1035_vm2, %v1213_v30  ;;  %v1090_v37 = vadd.f32 %v2142_v16, %v1089_v34 }
 0x31d   : > { %v1186_v7 = vadd.f32 %v1159_v29, %v1090_v37  ;;  %v1170_v62 = vpop.f32.mrf.mxu1 }
 0x31e   : > { %v1171_v47 = vadd.f32 %v2147_v19, %v1170_v62 }
 0x31f   : > { %v1202_v33 = vmax.f32 %v1186_v7, 0.0 }
 0x322   : > { %v1091_v32 = vpop.f32.mrf.mxu0 }
 0x323   : > { %v1092_v11 = vadd.f32 %v2142_v16, %v1091_v32 }
 0x325   : > { %v1187_v10 = vadd.f32 %v1161_v31, %v1092_v11  ;;  %v1173_v6 = vpop.f32.mrf.mxu1 }
 0x326   : > { %v1174_v54 = vadd.f32 %v2147_v19, %v1173_v6 }
 0x327   : > { %v1203_v41 = vmax.f32 %v1187_v10, 0.0 }
 0x329   : > { %v1214_v42 = vpack.c.bf16 %v1203_v41, %v1202_v33 }
 0x32a   : > { %v1094_v21 = vpop.f32.mrf.mxu0 }
 0x32b   : > { %1548 = vmatmul.msk.bf16.gmra.mxu2 %vm1035_vm2, %v1214_v42  ;;  %v1095_v44 = vadd.f32 %v2142_v16, %v1094_v21 }
 0x32d   : > { %v1188_v39 = vadd.f32 %v1164_v20, %v1095_v44  ;;  %v1175_v52 = vpop.f32.mrf.mxu1 }
 0x32e   : > { %v1176_v15 = vadd.f32 %v2147_v19, %v1175_v52 }
 0x32f   : > { %v1204_v49 = vmax.f32 %v1188_v39, 0.0 }
 0x332   : > { %v1096_v48 = vpop.f32.mrf.mxu0 }
 0x333   : > { %v1097_v38 = vadd.f32 %v2142_v16, %v1096_v48 }
 0x335   : > { %v1189_v40 = vadd.f32 %v1166_v36, %v1097_v38 }
 0x337   : > { %v1205_v51 = vmax.f32 %v1189_v40, 0.0 }
 0x339   : > { %v1215_v56 = vpack.c.bf16 %v1205_v51, %v1204_v49 }
 0x33b   : > { %1549 = vmatmul.msk.bf16.gmra.mxu2 %vm1035_vm2, %v1215_v56 }
 0x340   : > { %v1099_v58 = vpop.f32.mrf.mxu0 }
 0x341   : > { %v1100_v43 = vadd.f32 %v2142_v16, %v1099_v58 }
 0x343   : > { %v1190_v63 = vadd.f32 %v1169_v46, %v1100_v43 }
 0x345   : > { %v1206_v8 = vmax.f32 %v1190_v63, 0.0 }
 0x348   : > { %v1101_v45 = vpop.f32.mrf.mxu0 }
 0x349   : > { %v1102_v1 = vadd.f32 %v2142_v16, %v1101_v45 }
 0x34b   : > { %v1191_v5 = vadd.f32 %v1171_v47, %v1102_v1 }
 0x34d   : > { %v1207_v9 = vmax.f32 %v1191_v5, 0.0 }
 0x34f   : > { %v1216_v13 = vpack.c.bf16 %v1207_v9, %v1206_v8 }
 0x350   : > { %v1104_v50 = vpop.f32.mrf.mxu0 }
 0x351   : > { %1550 = vmatmul.msk.bf16.gmra.mxu2 %vm1035_vm2, %v1216_v13  ;;  %v1105_v53 = vadd.f32 %v2142_v16, %v1104_v50 }
 0x353   : > { %v1192_v18 = vadd.f32 %v1174_v54, %v1105_v53 }
 0x355   : > { %v1208_v60 = vmax.f32 %v1192_v18, 0.0 }
 0x358   : > { %v1106_v14 = vpop.f32.mrf.mxu0 }
 0x359   : > { %v1107_v22 = vadd.f32 %v2142_v16, %v1106_v14 }
 0x35b   : > { %v1193_v57 = vadd.f32 %v1176_v15, %v1107_v22 }
 0x35d   : > { %v1209_v59 = vmax.f32 %v1193_v57, 0.0 }
 0x35f   : > { %v1217_v61 = vpack.c.bf16 %v1209_v59, %v1208_v60 }
 0x361   : > { %1551 = vmatmul.msk.bf16.gmra.mxu2 %vm1035_vm2, %v1217_v61 }
 0x36e   : > { %v1287_v25 = vpop.f32.mrf.mxu2 }
 0x36f   : > { %v1288_v23 = vadd.f32 %v1627_v24, %v1287_v25 }
 0x371   : > { %1327 = vst [vmem:[%s2195_s27] sm:$0xff] %v1288_v23 }
 0x376   : > { %v1289_v16 = vpop.f32.mrf.mxu2 }
 0x377   : > { %v1290_v19 = vadd.f32 %v1627_v24, %v1289_v16 }
 0x379   : > { %1328 = vst [vmem:[%s2195_s27 + $0x8] sm:$0xff] %v1290_v19 }
 0x37e   : > { %v1292_v26 = vpop.f32.mrf.mxu2 }
 0x37f   : > { %v1293_v27 = vadd.f32 %v1627_v24, %v1292_v26 }
 0x381   : > { %1329 = vst [vmem:[%s2195_s27 + $0x10] sm:$0xff] %v1293_v27 }
 0x386   : > { %v1294_v28 = vpop.f32.mrf.mxu2 }
 0x387   : > { %v1295_v0 = vadd.f32 %v1627_v24, %v1294_v28 }
 0x389   : > { %1330 = vst [vmem:[%s2195_s27 + $0x18] sm:$0xff] %v1295_v0 }
 0x38e   : > { %v1297_v3 = vpop.f32.mrf.mxu2 }
 0x38f   : > { %v1298_v2 = vadd.f32 %v1627_v24, %v1297_v3 }
 0x391   : > { %1331 = vst [vmem:[%s2195_s27 + $0x20] sm:$0xff] %v1298_v2 }
 0x396   : > { %v1299_v4 = vpop.f32.mrf.mxu2 }
 0x397   : > { %v1300_v30 = vadd.f32 %v1627_v24, %v1299_v4 }
 0x399   : > { %1332 = vst [vmem:[%s2195_s27 + $0x28] sm:$0xff] %v1300_v30 }
 0x39e   : > { %v1302_v34 = vpop.f32.mrf.mxu2 }
 0x39f   : > { %v1303_v35 = vadd.f32 %v1627_v24, %v1302_v34 }
 0x3a1   : > { %1333 = vst [vmem:[%s2195_s27 + $0x30] sm:$0xff] %v1303_v35 }
 0x3a6   : > { %v1304_v37 = vpop.f32.mrf.mxu2 }
 0x3a7   : > { %v1305_v29 = vadd.f32 %v1627_v24, %v1304_v37 }
 0x3a9   : > { %1334 = vst [vmem:[%s2195_s27 + $0x38] sm:$0xff] %v1305_v29 }
 0x3ae   : > { %v1307_v32 = vpop.f32.mrf.mxu2 }
 0x3af   : > { %v1308_v31 = vadd.f32 %v1627_v24, %v1307_v32 }
 0x3b1   : > { %1335 = vst [vmem:[%s2195_s27 + $0x40] sm:$0xff] %v1308_v31 }
 0x3b6   : > { %v1309_v7 = vpop.f32.mrf.mxu2 }
 0x3b7   : > { %v1310_v11 = vadd.f32 %v1627_v24, %v1309_v7 }
 0x3b9   : > { %1336 = vst [vmem:[%s2195_s27 + $0x48] sm:$0xff] %v1310_v11 }
 0x3be   : > { %v1312_v10 = vpop.f32.mrf.mxu2 }
 0x3bf   : > { %v1313_v12 = vadd.f32 %v1627_v24, %v1312_v10 }
 0x3c1   : > { %1337 = vst [vmem:[%s2195_s27 + $0x50] sm:$0xff] %v1313_v12 }
 0x3c6   : > { %v1314_v33 = vpop.f32.mrf.mxu2 }
 0x3c7   : > { %v1315_v41 = vadd.f32 %v1627_v24, %v1314_v33 }
 0x3c9   : > { %1338 = vst [vmem:[%s2195_s27 + $0x58] sm:$0xff] %v1315_v41 }
 0x3d4   : > { %v1317_v42 = vpop.f32.mrf.mxu2 }
 0x3d5   : > { %v1318_v21 = vadd.f32 %v1627_v24, %v1317_v42 }
 0x3d7   : > { %1339 = vst [vmem:[%s2195_s27 + $0x60] sm:$0xff] %v1318_v21 }
 0x3dc   : > { %v1319_v44 = vpop.f32.mrf.mxu2 }
 0x3dd   : > { %v1320_v17 = vadd.f32 %v1627_v24, %v1319_v44 }
 0x3df   : > { %1340 = vst [vmem:[%s2195_s27 + $0x68] sm:$0xff] %v1320_v17 }
 0x3e4   : > { %v1322_v20 = vpop.f32.mrf.mxu2 }
 0x3e5   : > { %v1323_v48 = vadd.f32 %v1627_v24, %v1322_v20 }
 0x3e7   : > { %1341 = vst [vmem:[%s2195_s27 + $0x70] sm:$0xff] %v1323_v48 }
 0x3ec   : > { %v1324_v36 = vpop.f32.mrf.mxu2 }
 0x3ed   : > { %v1325_v39 = vadd.f32 %v1627_v24, %v1324_v36 }
 0x3ef   : > { %1342 = vst [vmem:[%s2195_s27 + $0x78] sm:$0xff] %v1325_v39 }
 0x3f0   : > { %1655 = shalt.err (!%p1652_p3)
}
 0x3f1   : > { %s1692_s0 = smov 128   ;;  %s1693_s27 = smov 8  }
 0x3f2   : > { %1580 = dma.vmem_to_hbm [thread:$0]  (%p1812_p5), %s1357_s26, 2048, %s1359_s17, %s1344_s1, %s1692_s0, %s1692_s0, %s1693_s27  }
 0x3f3 PF: > { %p1586_p4 = scmp.ge.s32.totalorder %s1690_s21, 2  ;;  %s1373_s3 = sand.u32 1, %s1678_s18  }
 0x3f4   : > { %s1374_s16 = scalar_lea.sflag [#allocation3], %s1373_s3 }
 0x3f5   : > { %p1583_p7 = pnand %p1586_p4, %p1816_p6 }
 0x3f7   : > { %p1584_p8 = pneg %p1583_p7 }
 0x3f9   : > { %1673 = dma.done.wait (%p1584_p8), %s1374_s16, 2048  }
 0x3fa   : > { %1675 = vsyncadd (%p1584_p8), %s1374_s16, 4294965248  ;;  %s2276_s2 = sld [smem:[#allocation5_spill]]  ;;  %p25_p9 = scmp.ge.s32.totalorder %s1799_s24, 4  }
 0x3fb   : > { %s2277_s18 = smov %s1682_s19  ;;  %s2278_s19 = smov %s1686_s20 }
 0x3fc   : > { %s2280_s21 = smov %s1799_s24  ;;  %27 = sbr.rel (!%p25_p9) target bundleno = 8 (0x8), region = 115 }
 0x400   : > { %s2279_s20 = smov %s2276_s2 }
 0x401   :  { %1380 = vsyncpa [#allocation3], 1 }
 0x402   :  { %1382 = vsyncpa [#allocation3 + $0x1], 1 }

</bundles_post_ra>
